<compile_context>
chip_gen: v6e
topology: v6e:2x2x1
jax: 0.10.0
libtpu: 0.0.40
codegen_flags: <defaults>
</compile_context>

<pallas_src>
import functools

import jax
import jax.numpy as jnp
from jax.experimental import pallas as pl
from jax.experimental.pallas import tpu as pltpu


def _dense_block_kernel(x_ref, w_ref, b_ref, m_ref, out_ref, *,
                        W, Cin, G, L, C_total, n_lanes):
    """One batch-block (bb images folded into the lane axis).

    x_ref:   (Cin, n_lanes)        input channels x flattened (batch, H*W)
    w_ref:   (L*9, G, C_total)     per-layer, per-tap weights (only first C_i
                                   channel columns of layer i are non-zero)
    b_ref:   (L, G, 1)             per-layer biases
    m_ref:   (9, n_lanes) f32      border-validity mask per tap (also kills
                                   roll wrap across image / batch boundaries)
    out_ref: (C_total, n_lanes)    concatenated output features
    """
    f32 = jnp.float32
    taps = [(dh, dw) for dh in (-1, 0, 1) for dw in (-1, 0, 1)]

    feats = x_ref[...].astype(f32)                    # running concat (registers)

    for i in range(L):                                # static: fully unrolled
        c_cur = Cin + i * G                           # live contraction depth
        acc = jnp.zeros((G, n_lanes), f32)
        for t, (dh, dw) in enumerate(taps):
            off = dh * W + dw
            w_t = w_ref[i * 9 + t][:, :c_cur]         # (G, c_cur), prefix slice
            shifted = feats if off == 0 else pltpu.roll(
                feats, (-off) % n_lanes, axis=1)       # XLU lane rotate
            y_t = jnp.dot(w_t, shifted,
                          preferred_element_type=f32)  # (G, n_lanes) on MXU
            if not (dh == 0 and dw == 0):
                y_t = y_t * m_ref[t:t + 1, :]          # mask tiny result (VPU)
            acc = acc + y_t
        y = jnp.maximum(acc + b_ref[i], 0.0)           # bias + ReLU
        feats = jnp.concatenate([feats, y], axis=0)    # dense-block concat

    # Single full-block store: 8-row aligned, unmasked, lane-dense.
    out_ref[...] = feats.astype(out_ref.dtype)


def _tap_masks(H, W):
    """(9, H*W) f32 border-validity masks, tap order (dh, dw) row-major."""
    idx = jnp.arange(H * W, dtype=jnp.int32)
    r = idx // W
    c = idx % W
    masks = []
    for dh in (-1, 0, 1):
        for dw in (-1, 0, 1):
            v = jnp.ones((H * W,), jnp.float32)
            if dh == -1:
                v = v * (r >= 1)
            if dh == 1:
                v = v * (r <= H - 2)
            if dw == -1:
                v = v * (c >= 1)
            if dw == 1:
                v = v * (c <= W - 2)
            masks.append(v)
    return jnp.stack(masks, axis=0)


def _pack_weights(weights, G, L, C_total):
    """PyTorch-layout (G, C_i, 3, 3) weights -> (L*9, G, C_total):
    row = layer*9 + (kh*3 + kw); channel columns beyond C_i are zero."""
    packed = jnp.zeros((L, 9, G, C_total), jnp.float32)
    for i, w in enumerate(weights):
        c_i = w.shape[1]
        wt = jnp.transpose(w.astype(jnp.float32), (2, 3, 0, 1))  # (3,3,G,C_i)
        packed = packed.at[i, :, :, :c_i].set(wt.reshape(9, G, c_i))
    return packed.reshape(L * 9, G, C_total)


def _choose_batch_block(B, HW):
    """Fold batch elements into the lane axis.  Pick the largest divisor of B
    with lanes <= 4096, but keep >= 2 grid steps when B >= 2 (v7x has 2 TCs)."""
    best = 1
    for bb in range(1, B + 1):
        if B % bb:
            continue
        if bb > 1 and bb * HW > 4096:
            continue
        if B >= 2 and B // bb < 2:
            continue
        best = bb
    return best


def dense_conv_block(x_nchw, weights, biases):
    """DenseConvBlock forward.  x_nchw: (B, Cin, H, W); weights[i]:
    (G, Cin+i*G, 3, 3); biases[i]: (G,).  Returns (B, Cin+L*G, H, W)."""
    B, Cin, H, W = x_nchw.shape
    L = len(weights)
    G = weights[0].shape[0]
    C_total = Cin + L * G
    HW = H * W

    bb = _choose_batch_block(B, HW)
    steps = B // bb
    lanes = bb * HW

    w_packed = _pack_weights(weights, G, L, C_total)              # (L*9, G, C_total)
    b_packed = jnp.stack([b.astype(jnp.float32) for b in biases],
                         axis=0).reshape(L, G, 1)                 # (L, G, 1)
    masks = jnp.tile(_tap_masks(H, W), (1, bb))                   # (9, lanes)

    # (B, Cin, H, W) -> (steps, Cin, bb*HW); lane index = b_local*HW + h*W + w
    x_flat = (x_nchw.reshape(steps, bb, Cin, HW)
              .transpose(0, 2, 1, 3)
              .reshape(steps, Cin, lanes))

    kernel = functools.partial(_dense_block_kernel, W=W, Cin=Cin, G=G, L=L,
                               C_total=C_total, n_lanes=lanes)

    out_flat = pl.pallas_call(
        kernel,
        out_shape=jax.ShapeDtypeStruct((steps, C_total, lanes), x_nchw.dtype),
        grid_spec=pltpu.PrefetchScalarGridSpec(
            num_scalar_prefetch=0,
            grid=(steps,),
            in_specs=[
                pl.BlockSpec((None, Cin, lanes), lambda s: (s, 0, 0)),
                pl.BlockSpec((L * 9, G, C_total), lambda s: (0, 0, 0)),
                pl.BlockSpec((L, G, 1), lambda s: (0, 0, 0)),
                pl.BlockSpec((9, lanes), lambda s: (0, 0)),
            ],
            out_specs=pl.BlockSpec((None, C_total, lanes), lambda s: (s, 0, 0)),
        ),
        compiler_params=pltpu.CompilerParams(
            dimension_semantics=("parallel",)),
    )(x_flat, w_packed, b_packed, masks)

    # (steps, C_total, bb*HW) -> (B, C_total, H, W)
    out = (out_flat.reshape(steps, C_total, bb, H, W)
           .transpose(0, 2, 1, 3, 4)
           .reshape(B, C_total, H, W))
    return out


def reference(x, weights, biases):
    """Pure-JAX/XLA reference mirroring the PyTorch forward exactly."""
    feats = [x]
    for w, b in zip(weights, biases):
        inp = jnp.concatenate(feats, axis=1)
        y = jax.lax.conv_general_dilated(
            inp, w, window_strides=(1, 1), padding=((1, 1), (1, 1)),
            dimension_numbers=("NCHW", "OIHW", "NCHW"),
            precision=jax.lax.Precision.HIGHEST)
        feats.append(jnp.maximum(y + b[None, :, None, None], 0.0))
    return jnp.concatenate(feats, axis=1)


if __name__ == "__main__":
    # DenseConvBlock(in_channels=4, growth_rate=4, layers=3) on 16x16 images.
    B, Cin, G, L, H, W = 2, 4, 4, 3, 16, 16

    key = jax.random.PRNGKey(0)
    weights, biases = [], []
    for i in range(L):
        key, kw, kb = jax.random.split(key, 3)
        c_i = Cin + i * G
        weights.append(0.25 * jax.random.normal(kw, (G, c_i, 3, 3), jnp.float32))
        biases.append(0.1 * jax.random.normal(kb, (G,), jnp.float32))
    key, kx = jax.random.split(key)
    x = jax.random.normal(kx, (B, Cin, H, W), jnp.float32)

    out = jax.jit(dense_conv_block)(x, weights, biases)
    out = jax.block_until_ready(out)

    ref = reference(x, weights, biases)
    assert out.shape == (B, Cin + L * G, H, W), out.shape
    err = float(jnp.max(jnp.abs(out - ref)))
    scale = float(jnp.max(jnp.abs(ref))) + 1e-6
    assert err / scale < 2e-2, f"normalized max abs err {err / scale} (abs {err})"

    print("KERNEL_OK")
</pallas_src>

<mosaic_0001>
module attributes {stable_mosaic.version = 11 : i64} {
  func.func @_dense_block_kernel(%arg0: i32, %arg1: memref<1x4x256xf32, #tpu.memory_space<vmem>>, %arg2: memref<27x4x16xf32, #tpu.memory_space<vmem>>, %arg3: memref<3x4x1xf32, #tpu.memory_space<vmem>>, %arg4: memref<9x256xf32, #tpu.memory_space<vmem>>, %arg5: memref<1x16x256xf32, #tpu.memory_space<vmem>>) attributes {dimension_semantics = [#tpu.dimension_semantics<parallel>], iteration_bounds = array<i64: 2>, scalar_prefetch = 0 : i64, scratch_operands = 0 : i64, tpu.core_type = #tpu.core_type<tc>, window_params = [{transform_indices = @transform_0, window_bounds = array<i64: 1, 4, 256>}, {pipeline_mode = #tpu.pipeline_mode<synchronous>, transform_indices = @transform_1, window_bounds = array<i64: 27, 4, 16>}, {pipeline_mode = #tpu.pipeline_mode<synchronous>, transform_indices = @transform_2, window_bounds = array<i64: 3, 4, 1>}, {pipeline_mode = #tpu.pipeline_mode<synchronous>, transform_indices = @transform_3, window_bounds = array<i64: 9, 256>}, {transform_indices = @transform_4, window_bounds = array<i64: 1, 16, 256>}]} {
    %c0 = arith.constant 0 : index
    %c0_0 = arith.constant 0 : index
    %c0_1 = arith.constant 0 : index
    %0 = vector.load %arg1[%c0, %c0_0, %c0_1] : memref<1x4x256xf32, #tpu.memory_space<vmem>>, vector<1x4x256xf32>
    %1 = vector.shape_cast %0 : vector<1x4x256xf32> to vector<4x256xf32>
    %cst = arith.constant 0.000000e+00 : f32
    %2 = vector.broadcast %cst : f32 to vector<4x256xf32>
    %c0_2 = arith.constant 0 : index
    %c0_3 = arith.constant 0 : index
    %c0_4 = arith.constant 0 : index
    %3 = vector.load %arg2[%c0_2, %c0_3, %c0_4] : memref<27x4x16xf32, #tpu.memory_space<vmem>>, vector<1x4x16xf32>
    %4 = vector.shape_cast %3 : vector<1x4x16xf32> to vector<4x16xf32>
    %5 = vector.extract_strided_slice %4 {offsets = [0, 0], sizes = [4, 4], strides = [1, 1]} : vector<4x16xf32> to vector<4x4xf32>
    %c17_i32 = arith.constant 17 : i32
    %6 = tpu.dynamic_rotate %1 by %c17_i32 dim 1 : vector<4x256xf32>, i32 -> vector<4x256xf32>
    %cst_5 = arith.constant dense<0.000000e+00> : vector<4x256xf32>
    %7 = tpu.matmul %5, %6, %cst_5 {dimension_numbers = #tpu.dot_dimension_numbers<[1], [0], [0], [1], [0, 0, 1, 1], [], []>} : vector<4x4xf32>, vector<4x256xf32>, vector<4x256xf32> -> vector<4x256xf32>
    %c0_6 = arith.constant 0 : index
    %c0_7 = arith.constant 0 : index
    %8 = vector.load %arg4[%c0_6, %c0_7] : memref<9x256xf32, #tpu.memory_space<vmem>>, vector<1x256xf32>
    %9 = vector.broadcast %8 : vector<1x256xf32> to vector<4x256xf32>
    %10 = arith.mulf %7, %9 : vector<4x256xf32>
    %11 = arith.addf %2, %10 : vector<4x256xf32>
    %c1 = arith.constant 1 : index
    %c0_8 = arith.constant 0 : index
    %c0_9 = arith.constant 0 : index
    %12 = vector.load %arg2[%c1, %c0_8, %c0_9] : memref<27x4x16xf32, #tpu.memory_space<vmem>>, vector<1x4x16xf32>
    %13 = vector.shape_cast %12 : vector<1x4x16xf32> to vector<4x16xf32>
    %14 = vector.extract_strided_slice %13 {offsets = [0, 0], sizes = [4, 4], strides = [1, 1]} : vector<4x16xf32> to vector<4x4xf32>
    %c16_i32 = arith.constant 16 : i32
    %15 = tpu.dynamic_rotate %1 by %c16_i32 dim 1 : vector<4x256xf32>, i32 -> vector<4x256xf32>
    %cst_10 = arith.constant dense<0.000000e+00> : vector<4x256xf32>
    %16 = tpu.matmul %14, %15, %cst_10 {dimension_numbers = #tpu.dot_dimension_numbers<[1], [0], [0], [1], [0, 0, 1, 1], [], []>} : vector<4x4xf32>, vector<4x256xf32>, vector<4x256xf32> -> vector<4x256xf32>
    %c1_11 = arith.constant 1 : index
    %c0_12 = arith.constant 0 : index
    %17 = vector.load %arg4[%c1_11, %c0_12] : memref<9x256xf32, #tpu.memory_space<vmem>>, vector<1x256xf32>
    %18 = vector.broadcast %17 : vector<1x256xf32> to vector<4x256xf32>
    %19 = arith.mulf %16, %18 : vector<4x256xf32>
    %20 = arith.addf %11, %19 : vector<4x256xf32>
    %c2 = arith.constant 2 : index
    %c0_13 = arith.constant 0 : index
    %c0_14 = arith.constant 0 : index
    %21 = vector.load %arg2[%c2, %c0_13, %c0_14] : memref<27x4x16xf32, #tpu.memory_space<vmem>>, vector<1x4x16xf32>
    %22 = vector.shape_cast %21 : vector<1x4x16xf32> to vector<4x16xf32>
    %23 = vector.extract_strided_slice %22 {offsets = [0, 0], sizes = [4, 4], strides = [1, 1]} : vector<4x16xf32> to vector<4x4xf32>
    %c15_i32 = arith.constant 15 : i32
    %24 = tpu.dynamic_rotate %1 by %c15_i32 dim 1 : vector<4x256xf32>, i32 -> vector<4x256xf32>
    %cst_15 = arith.constant dense<0.000000e+00> : vector<4x256xf32>
    %25 = tpu.matmul %23, %24, %cst_15 {dimension_numbers = #tpu.dot_dimension_numbers<[1], [0], [0], [1], [0, 0, 1, 1], [], []>} : vector<4x4xf32>, vector<4x256xf32>, vector<4x256xf32> -> vector<4x256xf32>
    %c2_16 = arith.constant 2 : index
    %c0_17 = arith.constant 0 : index
    %26 = vector.load %arg4[%c2_16, %c0_17] : memref<9x256xf32, #tpu.memory_space<vmem>>, vector<1x256xf32>
    %27 = vector.broadcast %26 : vector<1x256xf32> to vector<4x256xf32>
    %28 = arith.mulf %25, %27 : vector<4x256xf32>
    %29 = arith.addf %20, %28 : vector<4x256xf32>
    %c3 = arith.constant 3 : index
    %c0_18 = arith.constant 0 : index
    %c0_19 = arith.constant 0 : index
    %30 = vector.load %arg2[%c3, %c0_18, %c0_19] : memref<27x4x16xf32, #tpu.memory_space<vmem>>, vector<1x4x16xf32>
    %31 = vector.shape_cast %30 : vector<1x4x16xf32> to vector<4x16xf32>
    %32 = vector.extract_strided_slice %31 {offsets = [0, 0], sizes = [4, 4], strides = [1, 1]} : vector<4x16xf32> to vector<4x4xf32>
    %c1_i32 = arith.constant 1 : i32
    %33 = tpu.dynamic_rotate %1 by %c1_i32 dim 1 : vector<4x256xf32>, i32 -> vector<4x256xf32>
    %cst_20 = arith.constant dense<0.000000e+00> : vector<4x256xf32>
    %34 = tpu.matmul %32, %33, %cst_20 {dimension_numbers = #tpu.dot_dimension_numbers<[1], [0], [0], [1], [0, 0, 1, 1], [], []>} : vector<4x4xf32>, vector<4x256xf32>, vector<4x256xf32> -> vector<4x256xf32>
    %c3_21 = arith.constant 3 : index
    %c0_22 = arith.constant 0 : index
    %35 = vector.load %arg4[%c3_21, %c0_22] : memref<9x256xf32, #tpu.memory_space<vmem>>, vector<1x256xf32>
    %36 = vector.broadcast %35 : vector<1x256xf32> to vector<4x256xf32>
    %37 = arith.mulf %34, %36 : vector<4x256xf32>
    %38 = arith.addf %29, %37 : vector<4x256xf32>
    %c4 = arith.constant 4 : index
    %c0_23 = arith.constant 0 : index
    %c0_24 = arith.constant 0 : index
    %39 = vector.load %arg2[%c4, %c0_23, %c0_24] : memref<27x4x16xf32, #tpu.memory_space<vmem>>, vector<1x4x16xf32>
    %40 = vector.shape_cast %39 : vector<1x4x16xf32> to vector<4x16xf32>
    %41 = vector.extract_strided_slice %40 {offsets = [0, 0], sizes = [4, 4], strides = [1, 1]} : vector<4x16xf32> to vector<4x4xf32>
    %cst_25 = arith.constant dense<0.000000e+00> : vector<4x256xf32>
    %42 = tpu.matmul %41, %1, %cst_25 {dimension_numbers = #tpu.dot_dimension_numbers<[1], [0], [0], [1], [0, 0, 1, 1], [], []>} : vector<4x4xf32>, vector<4x256xf32>, vector<4x256xf32> -> vector<4x256xf32>
    %43 = arith.addf %38, %42 : vector<4x256xf32>
    %c5 = arith.constant 5 : index
    %c0_26 = arith.constant 0 : index
    %c0_27 = arith.constant 0 : index
    %44 = vector.load %arg2[%c5, %c0_26, %c0_27] : memref<27x4x16xf32, #tpu.memory_space<vmem>>, vector<1x4x16xf32>
    %45 = vector.shape_cast %44 : vector<1x4x16xf32> to vector<4x16xf32>
    %46 = vector.extract_strided_slice %45 {offsets = [0, 0], sizes = [4, 4], strides = [1, 1]} : vector<4x16xf32> to vector<4x4xf32>
    %c255_i32 = arith.constant 255 : i32
    %47 = tpu.dynamic_rotate %1 by %c255_i32 dim 1 : vector<4x256xf32>, i32 -> vector<4x256xf32>
    %cst_28 = arith.constant dense<0.000000e+00> : vector<4x256xf32>
    %48 = tpu.matmul %46, %47, %cst_28 {dimension_numbers = #tpu.dot_dimension_numbers<[1], [0], [0], [1], [0, 0, 1, 1], [], []>} : vector<4x4xf32>, vector<4x256xf32>, vector<4x256xf32> -> vector<4x256xf32>
    %c5_29 = arith.constant 5 : index
    %c0_30 = arith.constant 0 : index
    %49 = vector.load %arg4[%c5_29, %c0_30] : memref<9x256xf32, #tpu.memory_space<vmem>>, vector<1x256xf32>
    %50 = vector.broadcast %49 : vector<1x256xf32> to vector<4x256xf32>
    %51 = arith.mulf %48, %50 : vector<4x256xf32>
    %52 = arith.addf %43, %51 : vector<4x256xf32>
    %c6 = arith.constant 6 : index
    %c0_31 = arith.constant 0 : index
    %c0_32 = arith.constant 0 : index
    %53 = vector.load %arg2[%c6, %c0_31, %c0_32] : memref<27x4x16xf32, #tpu.memory_space<vmem>>, vector<1x4x16xf32>
    %54 = vector.shape_cast %53 : vector<1x4x16xf32> to vector<4x16xf32>
    %55 = vector.extract_strided_slice %54 {offsets = [0, 0], sizes = [4, 4], strides = [1, 1]} : vector<4x16xf32> to vector<4x4xf32>
    %c241_i32 = arith.constant 241 : i32
    %56 = tpu.dynamic_rotate %1 by %c241_i32 dim 1 : vector<4x256xf32>, i32 -> vector<4x256xf32>
    %cst_33 = arith.constant dense<0.000000e+00> : vector<4x256xf32>
    %57 = tpu.matmul %55, %56, %cst_33 {dimension_numbers = #tpu.dot_dimension_numbers<[1], [0], [0], [1], [0, 0, 1, 1], [], []>} : vector<4x4xf32>, vector<4x256xf32>, vector<4x256xf32> -> vector<4x256xf32>
    %c6_34 = arith.constant 6 : index
    %c0_35 = arith.constant 0 : index
    %58 = vector.load %arg4[%c6_34, %c0_35] : memref<9x256xf32, #tpu.memory_space<vmem>>, vector<1x256xf32>
    %59 = vector.broadcast %58 : vector<1x256xf32> to vector<4x256xf32>
    %60 = arith.mulf %57, %59 : vector<4x256xf32>
    %61 = arith.addf %52, %60 : vector<4x256xf32>
    %c7 = arith.constant 7 : index
    %c0_36 = arith.constant 0 : index
    %c0_37 = arith.constant 0 : index
    %62 = vector.load %arg2[%c7, %c0_36, %c0_37] : memref<27x4x16xf32, #tpu.memory_space<vmem>>, vector<1x4x16xf32>
    %63 = vector.shape_cast %62 : vector<1x4x16xf32> to vector<4x16xf32>
    %64 = vector.extract_strided_slice %63 {offsets = [0, 0], sizes = [4, 4], strides = [1, 1]} : vector<4x16xf32> to vector<4x4xf32>
    %c240_i32 = arith.constant 240 : i32
    %65 = tpu.dynamic_rotate %1 by %c240_i32 dim 1 : vector<4x256xf32>, i32 -> vector<4x256xf32>
    %cst_38 = arith.constant dense<0.000000e+00> : vector<4x256xf32>
    %66 = tpu.matmul %64, %65, %cst_38 {dimension_numbers = #tpu.dot_dimension_numbers<[1], [0], [0], [1], [0, 0, 1, 1], [], []>} : vector<4x4xf32>, vector<4x256xf32>, vector<4x256xf32> -> vector<4x256xf32>
    %c7_39 = arith.constant 7 : index
    %c0_40 = arith.constant 0 : index
    %67 = vector.load %arg4[%c7_39, %c0_40] : memref<9x256xf32, #tpu.memory_space<vmem>>, vector<1x256xf32>
    %68 = vector.broadcast %67 : vector<1x256xf32> to vector<4x256xf32>
    %69 = arith.mulf %66, %68 : vector<4x256xf32>
    %70 = arith.addf %61, %69 : vector<4x256xf32>
    %c8 = arith.constant 8 : index
    %c0_41 = arith.constant 0 : index
    %c0_42 = arith.constant 0 : index
    %71 = vector.load %arg2[%c8, %c0_41, %c0_42] : memref<27x4x16xf32, #tpu.memory_space<vmem>>, vector<1x4x16xf32>
    %72 = vector.shape_cast %71 : vector<1x4x16xf32> to vector<4x16xf32>
    %73 = vector.extract_strided_slice %72 {offsets = [0, 0], sizes = [4, 4], strides = [1, 1]} : vector<4x16xf32> to vector<4x4xf32>
    %c239_i32 = arith.constant 239 : i32
    %74 = tpu.dynamic_rotate %1 by %c239_i32 dim 1 : vector<4x256xf32>, i32 -> vector<4x256xf32>
    %cst_43 = arith.constant dense<0.000000e+00> : vector<4x256xf32>
    %75 = tpu.matmul %73, %74, %cst_43 {dimension_numbers = #tpu.dot_dimension_numbers<[1], [0], [0], [1], [0, 0, 1, 1], [], []>} : vector<4x4xf32>, vector<4x256xf32>, vector<4x256xf32> -> vector<4x256xf32>
    %c8_44 = arith.constant 8 : index
    %c0_45 = arith.constant 0 : index
    %76 = vector.load %arg4[%c8_44, %c0_45] : memref<9x256xf32, #tpu.memory_space<vmem>>, vector<1x256xf32>
    %77 = vector.broadcast %76 : vector<1x256xf32> to vector<4x256xf32>
    %78 = arith.mulf %75, %77 : vector<4x256xf32>
    %79 = arith.addf %70, %78 : vector<4x256xf32>
    %c0_46 = arith.constant 0 : index
    %c0_47 = arith.constant 0 : index
    %c0_48 = arith.constant 0 : index
    %80 = vector.load %arg3[%c0_46, %c0_47, %c0_48] : memref<3x4x1xf32, #tpu.memory_space<vmem>>, vector<1x4x1xf32>
    %81 = vector.shape_cast %80 : vector<1x4x1xf32> to vector<4x1xf32>
    %82 = vector.broadcast %81 : vector<4x1xf32> to vector<4x256xf32>
    %83 = arith.addf %79, %82 : vector<4x256xf32>
    %cst_49 = arith.constant 0.000000e+00 : f32
    %84 = vector.broadcast %cst_49 : f32 to vector<4x256xf32>
    %85 = arith.maximumf %83, %84 : vector<4x256xf32>
    %86 = tpu.concatenate %1, %85 in 0 : vector<4x256xf32>, vector<4x256xf32> -> vector<8x256xf32>
    %cst_50 = arith.constant 0.000000e+00 : f32
    %87 = vector.broadcast %cst_50 : f32 to vector<4x256xf32>
    %c9 = arith.constant 9 : index
    %c0_51 = arith.constant 0 : index
    %c0_52 = arith.constant 0 : index
    %88 = vector.load %arg2[%c9, %c0_51, %c0_52] : memref<27x4x16xf32, #tpu.memory_space<vmem>>, vector<1x4x16xf32>
    %89 = vector.shape_cast %88 : vector<1x4x16xf32> to vector<4x16xf32>
    %90 = vector.extract_strided_slice %89 {offsets = [0, 0], sizes = [4, 8], strides = [1, 1]} : vector<4x16xf32> to vector<4x8xf32>
    %c17_i32_53 = arith.constant 17 : i32
    %91 = tpu.dynamic_rotate %86 by %c17_i32_53 dim 1 : vector<8x256xf32>, i32 -> vector<8x256xf32>
    %cst_54 = arith.constant dense<0.000000e+00> : vector<4x256xf32>
    %92 = tpu.matmul %90, %91, %cst_54 {dimension_numbers = #tpu.dot_dimension_numbers<[1], [0], [0], [1], [0, 0, 1, 1], [], []>} : vector<4x8xf32>, vector<8x256xf32>, vector<4x256xf32> -> vector<4x256xf32>
    %c0_55 = arith.constant 0 : index
    %c0_56 = arith.constant 0 : index
    %93 = vector.load %arg4[%c0_55, %c0_56] : memref<9x256xf32, #tpu.memory_space<vmem>>, vector<1x256xf32>
    %94 = vector.broadcast %93 : vector<1x256xf32> to vector<4x256xf32>
    %95 = arith.mulf %92, %94 : vector<4x256xf32>
    %96 = arith.addf %87, %95 : vector<4x256xf32>
    %c10 = arith.constant 10 : index
    %c0_57 = arith.constant 0 : index
    %c0_58 = arith.constant 0 : index
    %97 = vector.load %arg2[%c10, %c0_57, %c0_58] : memref<27x4x16xf32, #tpu.memory_space<vmem>>, vector<1x4x16xf32>
    %98 = vector.shape_cast %97 : vector<1x4x16xf32> to vector<4x16xf32>
    %99 = vector.extract_strided_slice %98 {offsets = [0, 0], sizes = [4, 8], strides = [1, 1]} : vector<4x16xf32> to vector<4x8xf32>
    %c16_i32_59 = arith.constant 16 : i32
    %100 = tpu.dynamic_rotate %86 by %c16_i32_59 dim 1 : vector<8x256xf32>, i32 -> vector<8x256xf32>
    %cst_60 = arith.constant dense<0.000000e+00> : vector<4x256xf32>
    %101 = tpu.matmul %99, %100, %cst_60 {dimension_numbers = #tpu.dot_dimension_numbers<[1], [0], [0], [1], [0, 0, 1, 1], [], []>} : vector<4x8xf32>, vector<8x256xf32>, vector<4x256xf32> -> vector<4x256xf32>
    %c1_61 = arith.constant 1 : index
    %c0_62 = arith.constant 0 : index
    %102 = vector.load %arg4[%c1_61, %c0_62] : memref<9x256xf32, #tpu.memory_space<vmem>>, vector<1x256xf32>
    %103 = vector.broadcast %102 : vector<1x256xf32> to vector<4x256xf32>
    %104 = arith.mulf %101, %103 : vector<4x256xf32>
    %105 = arith.addf %96, %104 : vector<4x256xf32>
    %c11 = arith.constant 11 : index
    %c0_63 = arith.constant 0 : index
    %c0_64 = arith.constant 0 : index
    %106 = vector.load %arg2[%c11, %c0_63, %c0_64] : memref<27x4x16xf32, #tpu.memory_space<vmem>>, vector<1x4x16xf32>
    %107 = vector.shape_cast %106 : vector<1x4x16xf32> to vector<4x16xf32>
    %108 = vector.extract_strided_slice %107 {offsets = [0, 0], sizes = [4, 8], strides = [1, 1]} : vector<4x16xf32> to vector<4x8xf32>
    %c15_i32_65 = arith.constant 15 : i32
    %109 = tpu.dynamic_rotate %86 by %c15_i32_65 dim 1 : vector<8x256xf32>, i32 -> vector<8x256xf32>
    %cst_66 = arith.constant dense<0.000000e+00> : vector<4x256xf32>
    %110 = tpu.matmul %108, %109, %cst_66 {dimension_numbers = #tpu.dot_dimension_numbers<[1], [0], [0], [1], [0, 0, 1, 1], [], []>} : vector<4x8xf32>, vector<8x256xf32>, vector<4x256xf32> -> vector<4x256xf32>
    %c2_67 = arith.constant 2 : index
    %c0_68 = arith.constant 0 : index
    %111 = vector.load %arg4[%c2_67, %c0_68] : memref<9x256xf32, #tpu.memory_space<vmem>>, vector<1x256xf32>
    %112 = vector.broadcast %111 : vector<1x256xf32> to vector<4x256xf32>
    %113 = arith.mulf %110, %112 : vector<4x256xf32>
    %114 = arith.addf %105, %113 : vector<4x256xf32>
    %c12 = arith.constant 12 : index
    %c0_69 = arith.constant 0 : index
    %c0_70 = arith.constant 0 : index
    %115 = vector.load %arg2[%c12, %c0_69, %c0_70] : memref<27x4x16xf32, #tpu.memory_space<vmem>>, vector<1x4x16xf32>
    %116 = vector.shape_cast %115 : vector<1x4x16xf32> to vector<4x16xf32>
    %117 = vector.extract_strided_slice %116 {offsets = [0, 0], sizes = [4, 8], strides = [1, 1]} : vector<4x16xf32> to vector<4x8xf32>
    %c1_i32_71 = arith.constant 1 : i32
    %118 = tpu.dynamic_rotate %86 by %c1_i32_71 dim 1 : vector<8x256xf32>, i32 -> vector<8x256xf32>
    %cst_72 = arith.constant dense<0.000000e+00> : vector<4x256xf32>
    %119 = tpu.matmul %117, %118, %cst_72 {dimension_numbers = #tpu.dot_dimension_numbers<[1], [0], [0], [1], [0, 0, 1, 1], [], []>} : vector<4x8xf32>, vector<8x256xf32>, vector<4x256xf32> -> vector<4x256xf32>
    %c3_73 = arith.constant 3 : index
    %c0_74 = arith.constant 0 : index
    %120 = vector.load %arg4[%c3_73, %c0_74] : memref<9x256xf32, #tpu.memory_space<vmem>>, vector<1x256xf32>
    %121 = vector.broadcast %120 : vector<1x256xf32> to vector<4x256xf32>
    %122 = arith.mulf %119, %121 : vector<4x256xf32>
    %123 = arith.addf %114, %122 : vector<4x256xf32>
    %c13 = arith.constant 13 : index
    %c0_75 = arith.constant 0 : index
    %c0_76 = arith.constant 0 : index
    %124 = vector.load %arg2[%c13, %c0_75, %c0_76] : memref<27x4x16xf32, #tpu.memory_space<vmem>>, vector<1x4x16xf32>
    %125 = vector.shape_cast %124 : vector<1x4x16xf32> to vector<4x16xf32>
    %126 = vector.extract_strided_slice %125 {offsets = [0, 0], sizes = [4, 8], strides = [1, 1]} : vector<4x16xf32> to vector<4x8xf32>
    %cst_77 = arith.constant dense<0.000000e+00> : vector<4x256xf32>
    %127 = tpu.matmul %126, %86, %cst_77 {dimension_numbers = #tpu.dot_dimension_numbers<[1], [0], [0], [1], [0, 0, 1, 1], [], []>} : vector<4x8xf32>, vector<8x256xf32>, vector<4x256xf32> -> vector<4x256xf32>
    %128 = arith.addf %123, %127 : vector<4x256xf32>
    %c14 = arith.constant 14 : index
    %c0_78 = arith.constant 0 : index
    %c0_79 = arith.constant 0 : index
    %129 = vector.load %arg2[%c14, %c0_78, %c0_79] : memref<27x4x16xf32, #tpu.memory_space<vmem>>, vector<1x4x16xf32>
    %130 = vector.shape_cast %129 : vector<1x4x16xf32> to vector<4x16xf32>
    %131 = vector.extract_strided_slice %130 {offsets = [0, 0], sizes = [4, 8], strides = [1, 1]} : vector<4x16xf32> to vector<4x8xf32>
    %c255_i32_80 = arith.constant 255 : i32
    %132 = tpu.dynamic_rotate %86 by %c255_i32_80 dim 1 : vector<8x256xf32>, i32 -> vector<8x256xf32>
    %cst_81 = arith.constant dense<0.000000e+00> : vector<4x256xf32>
    %133 = tpu.matmul %131, %132, %cst_81 {dimension_numbers = #tpu.dot_dimension_numbers<[1], [0], [0], [1], [0, 0, 1, 1], [], []>} : vector<4x8xf32>, vector<8x256xf32>, vector<4x256xf32> -> vector<4x256xf32>
    %c5_82 = arith.constant 5 : index
    %c0_83 = arith.constant 0 : index
    %134 = vector.load %arg4[%c5_82, %c0_83] : memref<9x256xf32, #tpu.memory_space<vmem>>, vector<1x256xf32>
    %135 = vector.broadcast %134 : vector<1x256xf32> to vector<4x256xf32>
    %136 = arith.mulf %133, %135 : vector<4x256xf32>
    %137 = arith.addf %128, %136 : vector<4x256xf32>
    %c15 = arith.constant 15 : index
    %c0_84 = arith.constant 0 : index
    %c0_85 = arith.constant 0 : index
    %138 = vector.load %arg2[%c15, %c0_84, %c0_85] : memref<27x4x16xf32, #tpu.memory_space<vmem>>, vector<1x4x16xf32>
    %139 = vector.shape_cast %138 : vector<1x4x16xf32> to vector<4x16xf32>
    %140 = vector.extract_strided_slice %139 {offsets = [0, 0], sizes = [4, 8], strides = [1, 1]} : vector<4x16xf32> to vector<4x8xf32>
    %c241_i32_86 = arith.constant 241 : i32
    %141 = tpu.dynamic_rotate %86 by %c241_i32_86 dim 1 : vector<8x256xf32>, i32 -> vector<8x256xf32>
    %cst_87 = arith.constant dense<0.000000e+00> : vector<4x256xf32>
    %142 = tpu.matmul %140, %141, %cst_87 {dimension_numbers = #tpu.dot_dimension_numbers<[1], [0], [0], [1], [0, 0, 1, 1], [], []>} : vector<4x8xf32>, vector<8x256xf32>, vector<4x256xf32> -> vector<4x256xf32>
    %c6_88 = arith.constant 6 : index
    %c0_89 = arith.constant 0 : index
    %143 = vector.load %arg4[%c6_88, %c0_89] : memref<9x256xf32, #tpu.memory_space<vmem>>, vector<1x256xf32>
    %144 = vector.broadcast %143 : vector<1x256xf32> to vector<4x256xf32>
    %145 = arith.mulf %142, %144 : vector<4x256xf32>
    %146 = arith.addf %137, %145 : vector<4x256xf32>
    %c16 = arith.constant 16 : index
    %c0_90 = arith.constant 0 : index
    %c0_91 = arith.constant 0 : index
    %147 = vector.load %arg2[%c16, %c0_90, %c0_91] : memref<27x4x16xf32, #tpu.memory_space<vmem>>, vector<1x4x16xf32>
    %148 = vector.shape_cast %147 : vector<1x4x16xf32> to vector<4x16xf32>
    %149 = vector.extract_strided_slice %148 {offsets = [0, 0], sizes = [4, 8], strides = [1, 1]} : vector<4x16xf32> to vector<4x8xf32>
    %c240_i32_92 = arith.constant 240 : i32
    %150 = tpu.dynamic_rotate %86 by %c240_i32_92 dim 1 : vector<8x256xf32>, i32 -> vector<8x256xf32>
    %cst_93 = arith.constant dense<0.000000e+00> : vector<4x256xf32>
    %151 = tpu.matmul %149, %150, %cst_93 {dimension_numbers = #tpu.dot_dimension_numbers<[1], [0], [0], [1], [0, 0, 1, 1], [], []>} : vector<4x8xf32>, vector<8x256xf32>, vector<4x256xf32> -> vector<4x256xf32>
    %c7_94 = arith.constant 7 : index
    %c0_95 = arith.constant 0 : index
    %152 = vector.load %arg4[%c7_94, %c0_95] : memref<9x256xf32, #tpu.memory_space<vmem>>, vector<1x256xf32>
    %153 = vector.broadcast %152 : vector<1x256xf32> to vector<4x256xf32>
    %154 = arith.mulf %151, %153 : vector<4x256xf32>
    %155 = arith.addf %146, %154 : vector<4x256xf32>
    %c17 = arith.constant 17 : index
    %c0_96 = arith.constant 0 : index
    %c0_97 = arith.constant 0 : index
    %156 = vector.load %arg2[%c17, %c0_96, %c0_97] : memref<27x4x16xf32, #tpu.memory_space<vmem>>, vector<1x4x16xf32>
    %157 = vector.shape_cast %156 : vector<1x4x16xf32> to vector<4x16xf32>
    %158 = vector.extract_strided_slice %157 {offsets = [0, 0], sizes = [4, 8], strides = [1, 1]} : vector<4x16xf32> to vector<4x8xf32>
    %c239_i32_98 = arith.constant 239 : i32
    %159 = tpu.dynamic_rotate %86 by %c239_i32_98 dim 1 : vector<8x256xf32>, i32 -> vector<8x256xf32>
    %cst_99 = arith.constant dense<0.000000e+00> : vector<4x256xf32>
    %160 = tpu.matmul %158, %159, %cst_99 {dimension_numbers = #tpu.dot_dimension_numbers<[1], [0], [0], [1], [0, 0, 1, 1], [], []>} : vector<4x8xf32>, vector<8x256xf32>, vector<4x256xf32> -> vector<4x256xf32>
    %c8_100 = arith.constant 8 : index
    %c0_101 = arith.constant 0 : index
    %161 = vector.load %arg4[%c8_100, %c0_101] : memref<9x256xf32, #tpu.memory_space<vmem>>, vector<1x256xf32>
    %162 = vector.broadcast %161 : vector<1x256xf32> to vector<4x256xf32>
    %163 = arith.mulf %160, %162 : vector<4x256xf32>
    %164 = arith.addf %155, %163 : vector<4x256xf32>
    %c1_102 = arith.constant 1 : index
    %c0_103 = arith.constant 0 : index
    %c0_104 = arith.constant 0 : index
    %165 = vector.load %arg3[%c1_102, %c0_103, %c0_104] : memref<3x4x1xf32, #tpu.memory_space<vmem>>, vector<1x4x1xf32>
    %166 = vector.shape_cast %165 : vector<1x4x1xf32> to vector<4x1xf32>
    %167 = vector.broadcast %166 : vector<4x1xf32> to vector<4x256xf32>
    %168 = arith.addf %164, %167 : vector<4x256xf32>
    %cst_105 = arith.constant 0.000000e+00 : f32
    %169 = vector.broadcast %cst_105 : f32 to vector<4x256xf32>
    %170 = arith.maximumf %168, %169 : vector<4x256xf32>
    %171 = tpu.concatenate %86, %170 in 0 : vector<8x256xf32>, vector<4x256xf32> -> vector<12x256xf32>
    %cst_106 = arith.constant 0.000000e+00 : f32
    %172 = vector.broadcast %cst_106 : f32 to vector<4x256xf32>
    %c18 = arith.constant 18 : index
    %c0_107 = arith.constant 0 : index
    %c0_108 = arith.constant 0 : index
    %173 = vector.load %arg2[%c18, %c0_107, %c0_108] : memref<27x4x16xf32, #tpu.memory_space<vmem>>, vector<1x4x16xf32>
    %174 = vector.shape_cast %173 : vector<1x4x16xf32> to vector<4x16xf32>
    %175 = vector.extract_strided_slice %174 {offsets = [0, 0], sizes = [4, 12], strides = [1, 1]} : vector<4x16xf32> to vector<4x12xf32>
    %c17_i32_109 = arith.constant 17 : i32
    %176 = tpu.dynamic_rotate %171 by %c17_i32_109 dim 1 : vector<12x256xf32>, i32 -> vector<12x256xf32>
    %cst_110 = arith.constant dense<0.000000e+00> : vector<4x256xf32>
    %177 = tpu.matmul %175, %176, %cst_110 {dimension_numbers = #tpu.dot_dimension_numbers<[1], [0], [0], [1], [0, 0, 1, 1], [], []>} : vector<4x12xf32>, vector<12x256xf32>, vector<4x256xf32> -> vector<4x256xf32>
    %c0_111 = arith.constant 0 : index
    %c0_112 = arith.constant 0 : index
    %178 = vector.load %arg4[%c0_111, %c0_112] : memref<9x256xf32, #tpu.memory_space<vmem>>, vector<1x256xf32>
    %179 = vector.broadcast %178 : vector<1x256xf32> to vector<4x256xf32>
    %180 = arith.mulf %177, %179 : vector<4x256xf32>
    %181 = arith.addf %172, %180 : vector<4x256xf32>
    %c19 = arith.constant 19 : index
    %c0_113 = arith.constant 0 : index
    %c0_114 = arith.constant 0 : index
    %182 = vector.load %arg2[%c19, %c0_113, %c0_114] : memref<27x4x16xf32, #tpu.memory_space<vmem>>, vector<1x4x16xf32>
    %183 = vector.shape_cast %182 : vector<1x4x16xf32> to vector<4x16xf32>
    %184 = vector.extract_strided_slice %183 {offsets = [0, 0], sizes = [4, 12], strides = [1, 1]} : vector<4x16xf32> to vector<4x12xf32>
    %c16_i32_115 = arith.constant 16 : i32
    %185 = tpu.dynamic_rotate %171 by %c16_i32_115 dim 1 : vector<12x256xf32>, i32 -> vector<12x256xf32>
    %cst_116 = arith.constant dense<0.000000e+00> : vector<4x256xf32>
    %186 = tpu.matmul %184, %185, %cst_116 {dimension_numbers = #tpu.dot_dimension_numbers<[1], [0], [0], [1], [0, 0, 1, 1], [], []>} : vector<4x12xf32>, vector<12x256xf32>, vector<4x256xf32> -> vector<4x256xf32>
    %c1_117 = arith.constant 1 : index
    %c0_118 = arith.constant 0 : index
    %187 = vector.load %arg4[%c1_117, %c0_118] : memref<9x256xf32, #tpu.memory_space<vmem>>, vector<1x256xf32>
    %188 = vector.broadcast %187 : vector<1x256xf32> to vector<4x256xf32>
    %189 = arith.mulf %186, %188 : vector<4x256xf32>
    %190 = arith.addf %181, %189 : vector<4x256xf32>
    %c20 = arith.constant 20 : index
    %c0_119 = arith.constant 0 : index
    %c0_120 = arith.constant 0 : index
    %191 = vector.load %arg2[%c20, %c0_119, %c0_120] : memref<27x4x16xf32, #tpu.memory_space<vmem>>, vector<1x4x16xf32>
    %192 = vector.shape_cast %191 : vector<1x4x16xf32> to vector<4x16xf32>
    %193 = vector.extract_strided_slice %192 {offsets = [0, 0], sizes = [4, 12], strides = [1, 1]} : vector<4x16xf32> to vector<4x12xf32>
    %c15_i32_121 = arith.constant 15 : i32
    %194 = tpu.dynamic_rotate %171 by %c15_i32_121 dim 1 : vector<12x256xf32>, i32 -> vector<12x256xf32>
    %cst_122 = arith.constant dense<0.000000e+00> : vector<4x256xf32>
    %195 = tpu.matmul %193, %194, %cst_122 {dimension_numbers = #tpu.dot_dimension_numbers<[1], [0], [0], [1], [0, 0, 1, 1], [], []>} : vector<4x12xf32>, vector<12x256xf32>, vector<4x256xf32> -> vector<4x256xf32>
    %c2_123 = arith.constant 2 : index
    %c0_124 = arith.constant 0 : index
    %196 = vector.load %arg4[%c2_123, %c0_124] : memref<9x256xf32, #tpu.memory_space<vmem>>, vector<1x256xf32>
    %197 = vector.broadcast %196 : vector<1x256xf32> to vector<4x256xf32>
    %198 = arith.mulf %195, %197 : vector<4x256xf32>
    %199 = arith.addf %190, %198 : vector<4x256xf32>
    %c21 = arith.constant 21 : index
    %c0_125 = arith.constant 0 : index
    %c0_126 = arith.constant 0 : index
    %200 = vector.load %arg2[%c21, %c0_125, %c0_126] : memref<27x4x16xf32, #tpu.memory_space<vmem>>, vector<1x4x16xf32>
    %201 = vector.shape_cast %200 : vector<1x4x16xf32> to vector<4x16xf32>
    %202 = vector.extract_strided_slice %201 {offsets = [0, 0], sizes = [4, 12], strides = [1, 1]} : vector<4x16xf32> to vector<4x12xf32>
    %c1_i32_127 = arith.constant 1 : i32
    %203 = tpu.dynamic_rotate %171 by %c1_i32_127 dim 1 : vector<12x256xf32>, i32 -> vector<12x256xf32>
    %cst_128 = arith.constant dense<0.000000e+00> : vector<4x256xf32>
    %204 = tpu.matmul %202, %203, %cst_128 {dimension_numbers = #tpu.dot_dimension_numbers<[1], [0], [0], [1], [0, 0, 1, 1], [], []>} : vector<4x12xf32>, vector<12x256xf32>, vector<4x256xf32> -> vector<4x256xf32>
    %c3_129 = arith.constant 3 : index
    %c0_130 = arith.constant 0 : index
    %205 = vector.load %arg4[%c3_129, %c0_130] : memref<9x256xf32, #tpu.memory_space<vmem>>, vector<1x256xf32>
    %206 = vector.broadcast %205 : vector<1x256xf32> to vector<4x256xf32>
    %207 = arith.mulf %204, %206 : vector<4x256xf32>
    %208 = arith.addf %199, %207 : vector<4x256xf32>
    %c22 = arith.constant 22 : index
    %c0_131 = arith.constant 0 : index
    %c0_132 = arith.constant 0 : index
    %209 = vector.load %arg2[%c22, %c0_131, %c0_132] : memref<27x4x16xf32, #tpu.memory_space<vmem>>, vector<1x4x16xf32>
    %210 = vector.shape_cast %209 : vector<1x4x16xf32> to vector<4x16xf32>
    %211 = vector.extract_strided_slice %210 {offsets = [0, 0], sizes = [4, 12], strides = [1, 1]} : vector<4x16xf32> to vector<4x12xf32>
    %cst_133 = arith.constant dense<0.000000e+00> : vector<4x256xf32>
    %212 = tpu.matmul %211, %171, %cst_133 {dimension_numbers = #tpu.dot_dimension_numbers<[1], [0], [0], [1], [0, 0, 1, 1], [], []>} : vector<4x12xf32>, vector<12x256xf32>, vector<4x256xf32> -> vector<4x256xf32>
    %213 = arith.addf %208, %212 : vector<4x256xf32>
    %c23 = arith.constant 23 : index
    %c0_134 = arith.constant 0 : index
    %c0_135 = arith.constant 0 : index
    %214 = vector.load %arg2[%c23, %c0_134, %c0_135] : memref<27x4x16xf32, #tpu.memory_space<vmem>>, vector<1x4x16xf32>
    %215 = vector.shape_cast %214 : vector<1x4x16xf32> to vector<4x16xf32>
    %216 = vector.extract_strided_slice %215 {offsets = [0, 0], sizes = [4, 12], strides = [1, 1]} : vector<4x16xf32> to vector<4x12xf32>
    %c255_i32_136 = arith.constant 255 : i32
    %217 = tpu.dynamic_rotate %171 by %c255_i32_136 dim 1 : vector<12x256xf32>, i32 -> vector<12x256xf32>
    %cst_137 = arith.constant dense<0.000000e+00> : vector<4x256xf32>
    %218 = tpu.matmul %216, %217, %cst_137 {dimension_numbers = #tpu.dot_dimension_numbers<[1], [0], [0], [1], [0, 0, 1, 1], [], []>} : vector<4x12xf32>, vector<12x256xf32>, vector<4x256xf32> -> vector<4x256xf32>
    %c5_138 = arith.constant 5 : index
    %c0_139 = arith.constant 0 : index
    %219 = vector.load %arg4[%c5_138, %c0_139] : memref<9x256xf32, #tpu.memory_space<vmem>>, vector<1x256xf32>
    %220 = vector.broadcast %219 : vector<1x256xf32> to vector<4x256xf32>
    %221 = arith.mulf %218, %220 : vector<4x256xf32>
    %222 = arith.addf %213, %221 : vector<4x256xf32>
    %c24 = arith.constant 24 : index
    %c0_140 = arith.constant 0 : index
    %c0_141 = arith.constant 0 : index
    %223 = vector.load %arg2[%c24, %c0_140, %c0_141] : memref<27x4x16xf32, #tpu.memory_space<vmem>>, vector<1x4x16xf32>
    %224 = vector.shape_cast %223 : vector<1x4x16xf32> to vector<4x16xf32>
    %225 = vector.extract_strided_slice %224 {offsets = [0, 0], sizes = [4, 12], strides = [1, 1]} : vector<4x16xf32> to vector<4x12xf32>
    %c241_i32_142 = arith.constant 241 : i32
    %226 = tpu.dynamic_rotate %171 by %c241_i32_142 dim 1 : vector<12x256xf32>, i32 -> vector<12x256xf32>
    %cst_143 = arith.constant dense<0.000000e+00> : vector<4x256xf32>
    %227 = tpu.matmul %225, %226, %cst_143 {dimension_numbers = #tpu.dot_dimension_numbers<[1], [0], [0], [1], [0, 0, 1, 1], [], []>} : vector<4x12xf32>, vector<12x256xf32>, vector<4x256xf32> -> vector<4x256xf32>
    %c6_144 = arith.constant 6 : index
    %c0_145 = arith.constant 0 : index
    %228 = vector.load %arg4[%c6_144, %c0_145] : memref<9x256xf32, #tpu.memory_space<vmem>>, vector<1x256xf32>
    %229 = vector.broadcast %228 : vector<1x256xf32> to vector<4x256xf32>
    %230 = arith.mulf %227, %229 : vector<4x256xf32>
    %231 = arith.addf %222, %230 : vector<4x256xf32>
    %c25 = arith.constant 25 : index
    %c0_146 = arith.constant 0 : index
    %c0_147 = arith.constant 0 : index
    %232 = vector.load %arg2[%c25, %c0_146, %c0_147] : memref<27x4x16xf32, #tpu.memory_space<vmem>>, vector<1x4x16xf32>
    %233 = vector.shape_cast %232 : vector<1x4x16xf32> to vector<4x16xf32>
    %234 = vector.extract_strided_slice %233 {offsets = [0, 0], sizes = [4, 12], strides = [1, 1]} : vector<4x16xf32> to vector<4x12xf32>
    %c240_i32_148 = arith.constant 240 : i32
    %235 = tpu.dynamic_rotate %171 by %c240_i32_148 dim 1 : vector<12x256xf32>, i32 -> vector<12x256xf32>
    %cst_149 = arith.constant dense<0.000000e+00> : vector<4x256xf32>
    %236 = tpu.matmul %234, %235, %cst_149 {dimension_numbers = #tpu.dot_dimension_numbers<[1], [0], [0], [1], [0, 0, 1, 1], [], []>} : vector<4x12xf32>, vector<12x256xf32>, vector<4x256xf32> -> vector<4x256xf32>
    %c7_150 = arith.constant 7 : index
    %c0_151 = arith.constant 0 : index
    %237 = vector.load %arg4[%c7_150, %c0_151] : memref<9x256xf32, #tpu.memory_space<vmem>>, vector<1x256xf32>
    %238 = vector.broadcast %237 : vector<1x256xf32> to vector<4x256xf32>
    %239 = arith.mulf %236, %238 : vector<4x256xf32>
    %240 = arith.addf %231, %239 : vector<4x256xf32>
    %c26 = arith.constant 26 : index
    %c0_152 = arith.constant 0 : index
    %c0_153 = arith.constant 0 : index
    %241 = vector.load %arg2[%c26, %c0_152, %c0_153] : memref<27x4x16xf32, #tpu.memory_space<vmem>>, vector<1x4x16xf32>
    %242 = vector.shape_cast %241 : vector<1x4x16xf32> to vector<4x16xf32>
    %243 = vector.extract_strided_slice %242 {offsets = [0, 0], sizes = [4, 12], strides = [1, 1]} : vector<4x16xf32> to vector<4x12xf32>
    %c239_i32_154 = arith.constant 239 : i32
    %244 = tpu.dynamic_rotate %171 by %c239_i32_154 dim 1 : vector<12x256xf32>, i32 -> vector<12x256xf32>
    %cst_155 = arith.constant dense<0.000000e+00> : vector<4x256xf32>
    %245 = tpu.matmul %243, %244, %cst_155 {dimension_numbers = #tpu.dot_dimension_numbers<[1], [0], [0], [1], [0, 0, 1, 1], [], []>} : vector<4x12xf32>, vector<12x256xf32>, vector<4x256xf32> -> vector<4x256xf32>
    %c8_156 = arith.constant 8 : index
    %c0_157 = arith.constant 0 : index
    %246 = vector.load %arg4[%c8_156, %c0_157] : memref<9x256xf32, #tpu.memory_space<vmem>>, vector<1x256xf32>
    %247 = vector.broadcast %246 : vector<1x256xf32> to vector<4x256xf32>
    %248 = arith.mulf %245, %247 : vector<4x256xf32>
    %249 = arith.addf %240, %248 : vector<4x256xf32>
    %c2_158 = arith.constant 2 : index
    %c0_159 = arith.constant 0 : index
    %c0_160 = arith.constant 0 : index
    %250 = vector.load %arg3[%c2_158, %c0_159, %c0_160] : memref<3x4x1xf32, #tpu.memory_space<vmem>>, vector<1x4x1xf32>
    %251 = vector.shape_cast %250 : vector<1x4x1xf32> to vector<4x1xf32>
    %252 = vector.broadcast %251 : vector<4x1xf32> to vector<4x256xf32>
    %253 = arith.addf %249, %252 : vector<4x256xf32>
    %cst_161 = arith.constant 0.000000e+00 : f32
    %254 = vector.broadcast %cst_161 : f32 to vector<4x256xf32>
    %255 = arith.maximumf %253, %254 : vector<4x256xf32>
    %256 = tpu.concatenate %171, %255 in 0 : vector<12x256xf32>, vector<4x256xf32> -> vector<16x256xf32>
    %c0_162 = arith.constant 0 : index
    %c0_163 = arith.constant 0 : index
    %c0_164 = arith.constant 0 : index
    %257 = vector.load %arg5[%c0_162, %c0_163, %c0_164] : memref<1x16x256xf32, #tpu.memory_space<vmem>>, vector<1x16x256xf32>
    %258 = vector.shape_cast %257 : vector<1x16x256xf32> to vector<16x256xf32>
    %259 = vector.shape_cast %256 : vector<16x256xf32> to vector<1x16x256xf32>
    tpu.vector_store %arg5[%c0_162, %c0_163, %c0_164], %259 {strides = array<i32>} : memref<1x16x256xf32, #tpu.memory_space<vmem>>, vector<1x16x256xf32>,
    return
  }
  func.func @transform_0(%arg0: i32) -> (i32, i32, i32) {
    %c0_i32 = arith.constant 0 : i32
    %c0_i32_0 = arith.constant 0 : i32
    %c0_i32_1 = arith.constant 0 : i32
    return %arg0, %c0_i32, %c0_i32_0 : i32, i32, i32
  }
  func.func @transform_1(%arg0: i32) -> (i32, i32, i32) {
    %c0_i32 = arith.constant 0 : i32
    %c0_i32_0 = arith.constant 0 : i32
    %c0_i32_1 = arith.constant 0 : i32
    %c0_i32_2 = arith.constant 0 : i32
    return %c0_i32, %c0_i32_0, %c0_i32_1 : i32, i32, i32
  }
  func.func @transform_2(%arg0: i32) -> (i32, i32, i32) {
    %c0_i32 = arith.constant 0 : i32
    %c0_i32_0 = arith.constant 0 : i32
    %c0_i32_1 = arith.constant 0 : i32
    %c0_i32_2 = arith.constant 0 : i32
    return %c0_i32, %c0_i32_0, %c0_i32_1 : i32, i32, i32
  }
  func.func @transform_3(%arg0: i32) -> (i32, i32) {
    %c0_i32 = arith.constant 0 : i32
    %c0_i32_0 = arith.constant 0 : i32
    %c0_i32_1 = arith.constant 0 : i32
    return %c0_i32, %c0_i32_0 : i32, i32
  }
  func.func @transform_4(%arg0: i32) -> (i32, i32, i32) {
    %c0_i32 = arith.constant 0 : i32
    %c0_i32_0 = arith.constant 0 : i32
    %c0_i32_1 = arith.constant 0 : i32
    return %arg0, %c0_i32, %c0_i32_0 : i32, i32, i32
  }
}

</mosaic_0001>

<bundles_post_ra>
// kernel: dense_conv_block.1
= control target key start
LH: loop header
LB: loop body
LE: loop exit
PB: predicated region body
PF: predicated region fallthrough
CT: control target
= control target key end

     0   :  { %s3004_s15 = smov 0   ;;  %s3625_s0 = inlined_call_operand.vmem [shape: f32[2,4,256], index: 0, kind: input, shape index: {}]   ;;  %s3626_s1 = inlined_call_operand.vmem [shape: f32[27,4,16], index: 1, kind: input, shape index: {}]   ;;  %s3627_s2 = inlined_call_operand.vmem [shape: f32[3,4,1], index: 2, kind: input, shape index: {}]   ;;  %s3628_s3 = inlined_call_operand.vmem [shape: f32[9,256], index: 3, kind: input, shape index: {}]   ;;  %s3629_s4 = inlined_call_operand.vmem [shape: f32[2,16,256], index: 4, kind: output, shape index: {}]  }
   0x1 LB: > { %s2829_s16 = sadd.s32 4294967295, %s2967_s15   ;;  %p2833_p0 = scmp.ge.s32.totalorder %s2967_s15, 1  ;;  %s2967_s15 = sphi %s3004_s15, %s14_s15  }
   0x2   : > { %p162_p1 = scmp.lt.s32.totalorder %s2967_s15, 3 }
   0x4   : > { %p163_p2 = pnand %p2833_p0, %p162_p1 }
   0x5   : > { %p188_p3 = scmp.lt.s32.totalorder (!%p163_p2), %s2829_s16, 1  ;;  %s2970_s21 = smov (!%p163_p2), 16  }
   0x6   : > { %166 = sbr.rel (%p163_p2) target bundleno = 1073 (0x431), region = 36  ;;  %s2971_s22 = smov (!%p163_p2), 17  }
   0x7   : > { %s2972_s23 = smov (!%p163_p2), 15   ;;  %s2973_s24 = smov (!%p163_p2), 1  }
   0x8   : > { %s2974_s25 = smov (!%p163_p2), 127   ;;  %s2976_s26 = smov (!%p163_p2), 113  }
   0x9   : > { %s2977_s27 = smov (!%p163_p2), 112   ;;  %s2978_s28 = smov (!%p163_p2), 111  }
   0xb   : > { %s3631_s16 = smov (!%p188_p3, %s2829_s16), 1  ;;  %v2969_v0 = vmov 0.0   ;;  %v2975_v3 = vmov 0   ;;  %v1134_v4 = vld [vmem:[%s3627_s2] sm:$0xf]  ;;  %v207_v5 = vlaneseq  ;;  %vm216_vm1 = vcmask 1043456  }
   0xc   : > { %s2938_s17 = sshll.u32 %s3631_s16, 3  ;;  %287 = vmatprep.mubr.f32.mxu0 %v2969_v0  ;;  %392 = vmatprep.mubr.f32.mxu1 %v2969_v0  ;;  %v2841_v13 = vld [vmem:[%s3626_s1 + $0x4] sm:$0xf]  ;;  %vm212_vm3 = vcmask 31744   ;;  %v199_v18 = vld [vmem:[%s3626_s1] sm:$0xf] }
   0xd   : > { %s192_s20 = scalar_lea.vmem %s3625_s0, %s2938_s17  ;;  %2958 = vset.pattern.permute.xlu0 %v2975_v3  ;;  %2959 = vset.pattern.permute.xlu1 %v2975_v3  ;;  %v3062_v6 = vand.u32 127, %v207_v5  ;;  %v2846_v25 = vld [vmem:[%s3626_s1 + $0x8] sm:$0xf]  ;;  %v2851_v26 = vld [vmem:[%s3626_s1 + $0xc] sm:$0xf]  ;;  %v297_v48 = vshrl.u32 %v207_v5, 7 }
   0xe   : > { %v3020_v1 = vld [vmem:[%s192_s20] sm:$0xff]  ;;  %v2856_v31 = vld [vmem:[%s3626_s1 + $0x10] sm:$0xf]  ;;  %v2860_v32 = vld [vmem:[%s3626_s1 + $0x14] sm:$0xf]  ;;  %s2939_s7 = sshll.u32 %s3631_s16, 5 }
   0xf   : > { %312 = vrot.lane.b32.xlu1 %v3020_v1, %s2970_s21  ;;  %203 = vrot.lane.b32.xlu0 %v3020_v1, %s2971_s22  ;;  %v3028_v2 = vcombine.high %v3020_v1, %v3020_v1  ;;  %vm316_vm0 = vcmp.lt.s32.totalorder %v3062_v6, 16  ;;  %vm209_vm2 = vcmp.lt.s32.totalorder %v3062_v6, 17  ;;  %vm422_vm4 = vcmp.lt.s32.totalorder %v3062_v6, 15  ;;  %v2865_v37 = vld [vmem:[%s3626_s1 + $0x18] sm:$0xf]  ;;  %s3256_s10 = scalar_lea.vmem %s3629_s4, %s2939_s7 }
  0x10   : > { %vm528_vm5 = vcmp.lt.s32.totalorder %v3062_v6, 1  ;;  %vm716_vm6 = vcmp.lt.s32.totalorder %v3062_v6, 127  ;;  %vm822_vm7 = vcmp.lt.s32.totalorder %v3062_v6, 113  ;;  %vm928_vm8 = vcmp.lt.s32.totalorder %v3062_v6, 112  ;;  %v2870_v42 = vld [vmem:[%s3626_s1 + $0x1c] sm:$0xf] }
  0x11   : > { %vm1034_vm9 = vcmp.lt.s32.totalorder %v3062_v6, 111  ;;  %v2875_v47 = vld [vmem:[%s3626_s1 + $0x20] sm:$0xf]  ;;  %v298_v49 = vsub.s32 0, %v297_v48  ;;  %v3173_v51 = vsub.s32 1, %v297_v48  ;;  %vm1160_vm10 = vcmask 64512  }
  0x12   : > { %v2845_v50 = vld [vmem:[%s3628_s3 + $0x1] ss:$8 sm:$0x3]  ;;  %v294_v52 = vld [vmem:[%s3628_s3] ss:$8 sm:$0x3] }
  0x13   : > { %418 = vrot.lane.b32.xlu0 %v3020_v1, %s2972_s23  ;;  %314 = vrot.lane.b32.xlu1 %v3028_v2, %s2970_s21  ;;  %v3178_v53 = vrot.slane %v2845_v50, %v298_v49  ;;  %v3180_v55 = vrot.slane %v294_v52, %v298_v49  ;;  %v3183_v56 = vrot.slane %v2845_v50, %v3173_v51  ;;  %v2850_v58 = vld [vmem:[%s3628_s3 + $0x2] ss:$8 sm:$0x3]  ;;  %v2855_v59 = vld [vmem:[%s3628_s3 + $0x3] ss:$8 sm:$0x3] }
  0x14   : > { %v3192_v60 = vrot.slane %v294_v52, %v3173_v51  ;;  %v3199_v5 = vrot.slane %v2855_v59, %v298_v49  ;;  %vm1938_vm11 = vcmask 97280  }
  0x17   : > { %420 = vrot.lane.b32.xlu1 %v3028_v2, %s2972_s23  ;;  %205 = vrot.lane.b32.xlu0 %v3028_v2, %s2971_s22 }
  0x1b   : > { %526 = vrot.lane.b32.xlu1 %v3028_v2, %s2973_s24  ;;  %524 = vrot.lane.b32.xlu0 %v3020_v1, %s2973_s24 }
  0x1f   : > { %714 = vrot.lane.b32.xlu1 %v3028_v2, %s2974_s25  ;;  %712 = vrot.lane.b32.xlu0 %v3020_v1, %s2974_s25 }
  0x23   : > { %820 = vrot.lane.b32.xlu1 %v3028_v2, %s2976_s26  ;;  %818 = vrot.lane.b32.xlu0 %v3020_v1, %s2976_s26 }
  0x27   : > { %926 = vrot.lane.b32.xlu1 %v3028_v2, %s2977_s27  ;;  %924 = vrot.lane.b32.xlu0 %v3020_v1, %s2977_s27 }
  0x2b   : > { %1032 = vrot.lane.b32.xlu1 %v3028_v2, %s2978_s28  ;;  %1030 = vrot.lane.b32.xlu0 %v3020_v1, %s2978_s28 }
  0x2f   : > { %1137 = vperm.xlu0 %2958, %v1134_v4   ;;  %v3197_v4 = vrot.slane %v2850_v58, %v298_v49 }
  0x81   : > { %v313_v7 = vpop.permute.xlu1 %312  ;;  %v204_v8 = vpop.permute.xlu0 %203 }
  0x85   : > { %v419_v9 = vpop.permute.xlu0 %418  ;;  %v315_v10 = vpop.permute.xlu1 %314 }
  0x86   : > { %v317_v11 = vsel %vm316_vm0, %v313_v7, %v315_v10  ;;  %v318_v12 = vsel %vm316_vm0, %v315_v10, %v313_v7 }
  0x87   : > { %2842 = vmatprep.subr.msk.mxu1 %vm216_vm1, %v317_v11  ;;  %v3206_v11 = vrot.slane %v2850_v58, %v3173_v51 }
  0x88   : > { %2843 = vmatpush1.msk.msra.mxu1 %vm216_vm1, %v318_v12  ;;  %v3209_v12 = vrot.slane %v2855_v59, %v3173_v51 }
  0x89   : > { %v421_v14 = vpop.permute.xlu1 %420  ;;  %v206_v15 = vpop.permute.xlu0 %205  ;;  %2844 = vmatmul.mubr.msk.f32.vlgmr.msra.gmra.mxu1 %vm212_vm3, %v2841_v13 }
  0x8a   : > { %v210_v16 = vsel %vm209_vm2, %v204_v8, %v206_v15  ;;  %v211_v17 = vsel %vm209_vm2, %v206_v15, %v204_v8  ;;  %604 = vmatprep.mubr.f32.mxu1 %v2969_v0  ;;  %v423_v19 = vsel %vm422_vm4, %v419_v9, %v421_v14  ;;  %v424_v20 = vsel %vm422_vm4, %v421_v14, %v419_v9  ;;  %v2864_v8 = vld [vmem:[%s3628_s3 + $0x5] ss:$8 sm:$0x3] }
  0x8b   : > { %2838 = vmatprep.subr.msk.mxu0 %vm216_vm1, %v210_v16 }
  0x8c   : > { %2839 = vmatpush1.msk.msra.mxu0 %vm216_vm1, %v211_v17 }
  0x8d   : > { %v527_v21 = vpop.permute.xlu1 %526  ;;  %2840 = vmatmul.mubr.msk.f32.vlgmr.msra.gmra.mxu0 %vm212_vm3, %v199_v18  ;;  %2847 = vmatprep.subr.msk.mxu0 %vm216_vm1, %v423_v19  ;;  %v525_v22 = vpop.permute.xlu0 %524  ;;  %v3213_v18 = vrot.slane %v2864_v8, %v298_v49 }
  0x8e   : > { %v529_v23 = vsel %vm528_vm5, %v525_v22, %v527_v21  ;;  %v530_v24 = vsel %vm528_vm5, %v527_v21, %v525_v22  ;;  %2848 = vmatpush1.msk.msra.mxu0 %vm216_vm1, %v424_v20  ;;  %498 = vmatprep.mubr.f32.mxu0 %v2969_v0  ;;  %v2869_v21 = vld [vmem:[%s3628_s3 + $0x6] ss:$8 sm:$0x3] }
  0x8f   : > { %2852 = vmatprep.subr.msk.mxu1 %vm216_vm1, %v529_v23  ;;  %2857 = vmatprep.subr.msk.mxu0 %vm216_vm1, %v3028_v2 }
  0x90   : > { %2853 = vmatpush1.msk.msra.mxu1 %vm216_vm1, %v530_v24 }
  0x91   : > { %v715_v27 = vpop.permute.xlu1 %714  ;;  %2849 = vmatmul.mubr.msk.f32.vlgmr.msra.gmra.mxu0 %vm212_vm3, %v2846_v25  ;;  %v713_v28 = vpop.permute.xlu0 %712  ;;  %2854 = vmatmul.mubr.msk.f32.vlgmr.msra.gmra.mxu1 %vm212_vm3, %v2851_v26 }
  0x92   : > { %v717_v29 = vsel %vm716_vm6, %v713_v28, %v715_v27  ;;  %v718_v30 = vsel %vm716_vm6, %v715_v27, %v713_v28  ;;  %2858 = vmatpush1.msk.msra.mxu0 %vm216_vm1, %v3020_v1  ;;  %701 = vmatprep.mubr.f32.mxu0 %v2969_v0  ;;  %v3221_v27 = vrot.slane %v2864_v8, %v3173_v51 }
  0x93   : > { %2861 = vmatprep.subr.msk.mxu1 %vm216_vm1, %v718_v30  ;;  %792 = vmatprep.mubr.f32.mxu1 %v2969_v0 }
  0x94   : > { %2862 = vmatpush1.msk.msra.mxu1 %vm216_vm1, %v717_v29 }
  0x95   : > { %v821_v33 = vpop.permute.xlu1 %820  ;;  %2859 = vmatmul.mubr.msk.f32.vlgmr.msra.gmra.mxu0 %vm212_vm3, %v2856_v31  ;;  %v819_v34 = vpop.permute.xlu0 %818  ;;  %2863 = vmatmul.mubr.msk.f32.vlgmr.msra.gmra.mxu1 %vm212_vm3, %v2860_v32  ;;  %v3224_v31 = vrot.slane %v2869_v21, %v298_v49  ;;  %v2874_v32 = vld [vmem:[%s3628_s3 + $0x7] ss:$8 sm:$0x3] }
  0x96   : > { %v823_v35 = vsel %vm822_vm7, %v819_v34, %v821_v33  ;;  %v824_v36 = vsel %vm822_vm7, %v821_v33, %v819_v34  ;;  %898 = vmatprep.mubr.f32.mxu0 %v2969_v0  ;;  %1004 = vmatprep.mubr.f32.mxu1 %v2969_v0 }
  0x97   : > { %2866 = vmatprep.subr.msk.mxu0 %vm216_vm1, %v824_v36 }
  0x98   : > { %2867 = vmatpush1.msk.msra.mxu0 %vm216_vm1, %v823_v35 }
  0x99   : > { %v927_v38 = vpop.permute.xlu1 %926  ;;  %2868 = vmatmul.mubr.msk.f32.vlgmr.msra.gmra.mxu0 %vm212_vm3, %v2865_v37  ;;  %v925_v39 = vpop.permute.xlu0 %924 }
  0x9a   : > { %v929_v40 = vsel %vm928_vm8, %v925_v39, %v927_v38  ;;  %v930_v41 = vsel %vm928_vm8, %v927_v38, %v925_v39  ;;  %1110 = vmatprep.mubr.f32.mxu0 %v2969_v0  ;;  %v3230_v38 = vrot.slane %v2869_v21, %v3173_v51  ;;  %v3232_v39 = vrot.slane %v2874_v32, %v298_v49 }
  0x9b   : > { %2871 = vmatprep.subr.msk.mxu1 %vm216_vm1, %v930_v41 }
  0x9c   : > { %2872 = vmatpush1.msk.msra.mxu1 %vm216_vm1, %v929_v40 }
  0x9d   : > { %v1033_v43 = vpop.permute.xlu1 %1032  ;;  %2873 = vmatmul.mubr.msk.f32.vlgmr.msra.gmra.mxu1 %vm212_vm3, %v2870_v42  ;;  %v1031_v44 = vpop.permute.xlu0 %1030 }
  0x9e   : > { %v1035_v45 = vsel %vm1034_vm9, %v1031_v44, %v1033_v43  ;;  %v1036_v46 = vsel %vm1034_vm9, %v1033_v43, %v1031_v44  ;;  %1228 = vmatprep.mubr.f32.mxu1 %v2969_v0  ;;  %v2879_v44 = vld [vmem:[%s3628_s3 + $0x10] ss:$8 sm:$0x3] }
  0x9f   : > { %2876 = vmatprep.subr.msk.mxu0 %vm216_vm1, %v1036_v46  ;;  %v3240_v46 = vrot.slane %v2874_v32, %v3173_v51  ;;  %v3242_v48 = vrot.slane %v2879_v44, %v298_v49 }
  0xa0   : > { %2877 = vmatpush1.msk.msra.mxu0 %vm216_vm1, %v1035_v45 }
  0xa1   : > { %2878 = vmatmul.mubr.msk.f32.vlgmr.msra.gmra.mxu0 %vm212_vm3, %v2875_v47 }
  0xa2   : > { %1314 = vmatprep.mubr.f32.mxu0 %v2969_v0 }
  0xaa   : > { %v1138_v8 = vpop.permute.xlu0 %1137 }
 0x149   : > { %v394_v54 = vpop.f32.mrf.mxu1 }
 0x14a   : > { %v412_v61 = vmul.f32 %v3178_v53, %v394_v54 }
 0x14b   : > { %v396_v57 = vpop.f32.mrf.mxu1 }
 0x14c   : > { %v413_v3 = vmul.f32 %v3183_v56, %v396_v57 }
 0x14d   : > { %v289_v62 = vpop.f32.mrf.mxu0 }
 0x14e   : > { %v306_v63 = vmul.f32 %v3180_v55, %v289_v62 }
 0x14f   : > { %v291_v7 = vpop.f32.mrf.mxu0 }
 0x150   : > { %v307_v9 = vmul.f32 %v3192_v60, %v291_v7  ;;  %v414_v10 = vadd.f32 %v412_v61, %v306_v63  ;;  %v3248_v61 = vrot.slane %v2879_v44, %v3173_v51 }
 0x151   : > { %v500_v13 = vpop.f32.mrf.mxu0  ;;  %v606_v14 = vpop.f32.mrf.mxu1 }
 0x152   : > { %v415_v15 = vadd.f32 %v413_v3, %v307_v9  ;;  %v518_v16 = vmul.f32 %v3197_v4, %v500_v13  ;;  %v624_v17 = vmul.f32 %v3199_v5, %v606_v14 }
 0x153   : > { %v502_v19 = vpop.f32.mrf.mxu0  ;;  %v608_v20 = vpop.f32.mrf.mxu1 }
 0x154   : > { %v520_v22 = vadd.f32 %v518_v16, %v414_v10  ;;  %v519_v23 = vmul.f32 %v3206_v11, %v502_v19  ;;  %v625_v24 = vmul.f32 %v3209_v12, %v608_v20 }
 0x155   : > { %v703_v25 = vpop.f32.mrf.mxu0  ;;  %v794_v26 = vpop.f32.mrf.mxu1 }
 0x156   : > { %v521_v28 = vadd.f32 %v519_v23, %v415_v15  ;;  %v626_v29 = vadd.f32 %v624_v17, %v520_v22  ;;  %v812_v30 = vmul.f32 %v3213_v18, %v794_v26 }
 0x157   : > { %v705_v33 = vpop.f32.mrf.mxu0  ;;  %v796_v34 = vpop.f32.mrf.mxu1 }
 0x158   : > { %v708_v35 = vadd.f32 %v703_v25, %v626_v29  ;;  %v627_v36 = vadd.f32 %v625_v24, %v521_v28  ;;  %v813_v42 = vmul.f32 %v3221_v27, %v796_v34  ;;  %v2880_v29 = vld [vmem:[%s3626_s1 + $0x24] sm:$0xf] }
 0x159   : > { %v900_v37 = vpop.f32.mrf.mxu0 }
 0x15a   : > { %v709_v40 = vadd.f32 %v705_v33, %v627_v36  ;;  %v814_v41 = vadd.f32 %v812_v30, %v708_v35  ;;  %v918_v43 = vmul.f32 %v3224_v31, %v900_v37  ;;  %v2882_v35 = vld [vmem:[%s3626_s1 + $0x28] sm:$0xf] }
 0x15b   : > { %v902_v45 = vpop.f32.mrf.mxu0 }
 0x15c   : > { %v815_v50 = vadd.f32 %v813_v42, %v709_v40  ;;  %v920_v52 = vadd.f32 %v918_v43, %v814_v41  ;;  %v919_v54 = vmul.f32 %v3230_v38, %v902_v45  ;;  %v2884_v41 = vld [vmem:[%s3626_s1 + $0x2c] sm:$0xf] }
 0x15d   : > { %v1006_v47 = vpop.f32.mrf.mxu1 }
 0x15e   : > { %v1024_v57 = vmul.f32 %v3232_v39, %v1006_v47  ;;  %v921_v63 = vadd.f32 %v919_v54, %v815_v50  ;;  %v2886_v47 = vld [vmem:[%s3626_s1 + $0x30] sm:$0xf]  ;;  %v2888_v50 = vld [vmem:[%s3626_s1 + $0x34] sm:$0xf] }
 0x15f   : > { %v1008_v58 = vpop.f32.mrf.mxu1 }
 0x160   : > { %v1025_v59 = vmul.f32 %v3240_v46, %v1008_v58  ;;  %v1026_v3 = vadd.f32 %v1024_v57, %v920_v52 }
 0x161   : > { %v1112_v62 = vpop.f32.mrf.mxu0 }
 0x162   : > { %v1130_v7 = vmul.f32 %v3242_v48, %v1112_v62  ;;  %v1027_v9 = vadd.f32 %v1025_v59, %v921_v63  ;;  %v2890_v59 = vld [vmem:[%s3626_s1 + $0x38] sm:$0xf] }
 0x163   : > { %v1114_v49 = vpop.f32.mrf.mxu0 }
 0x164   : > { %v1132_v10 = vadd.f32 %v1130_v7, %v1026_v3  ;;  %v1131_v13 = vmul.f32 %v3248_v61, %v1114_v49  ;;  %v2892_v7 = vld [vmem:[%s3626_s1 + $0x3c] sm:$0xf] }
 0x166   : > { %v1133_v14 = vadd.f32 %v1131_v13, %v1027_v9  ;;  %v1140_v15 = vadd.f32 %v1138_v8, %v1132_v10  ;;  %v2894_v13 = vld [vmem:[%s3626_s1 + $0x40] sm:$0xf] }
 0x168   : > { %v1141_v16 = vadd.f32 %v1138_v8, %v1133_v14  ;;  %v1142_v17 = vmax.f32 %v1140_v15, 0.0 }
 0x16a   : > { %v1143_v19 = vmax.f32 %v1141_v16, 0.0  ;;  %v1146_v20 = vrot.slane %v1142_v17, 4 }
 0x16c   : > { %v1147_v51 = vrot.slane %v1143_v19, 4  ;;  %v3260_v21 = vsel %vm216_vm1, %v3020_v1, %v1146_v20  ;;  %v2898_v1 = vld [vmem:[%s3627_s2 + $0x4] sm:$0xf] }
 0x16d   : > { %1241 = vrot.lane.b32.xlu0 %v3260_v21, %s2970_s21  ;;  %1154 = vrot.lane.b32.xlu1 %v3260_v21, %s2971_s22  ;;  %2770 = vst [vmem:[%s3256_s10] sm:$0xff] %v3260_v21  ;;  %v2896_v19 = vld [vmem:[%s3626_s1 + $0x44] sm:$0xf] }
 0x16e   : > { %v3270_v22 = vsel %vm216_vm1, %v3028_v2, %v1147_v51 }
 0x16f   : > { %2771 = vst [vmem:[%s3256_s10 + $0x8] sm:$0xff] %v3270_v22 }
 0x171   : > { %1327 = vrot.lane.b32.xlu0 %v3260_v21, %s2972_s23  ;;  %1156 = vrot.lane.b32.xlu1 %v3270_v22, %s2971_s22 }
 0x175   : > { %1413 = vrot.lane.b32.xlu0 %v3260_v21, %s2973_s24  ;;  %1243 = vrot.lane.b32.xlu1 %v3270_v22, %s2970_s21 }
 0x179   : > { %1577 = vrot.lane.b32.xlu0 %v3260_v21, %s2974_s25  ;;  %1329 = vrot.lane.b32.xlu1 %v3270_v22, %s2972_s23 }
 0x17d   : > { %1663 = vrot.lane.b32.xlu0 %v3260_v21, %s2976_s26  ;;  %1415 = vrot.lane.b32.xlu1 %v3270_v22, %s2973_s24 }
 0x181   : > { %1749 = vrot.lane.b32.xlu0 %v3260_v21, %s2977_s27  ;;  %1579 = vrot.lane.b32.xlu1 %v3270_v22, %s2974_s25 }
 0x185   : > { %1835 = vrot.lane.b32.xlu0 %v3260_v21, %s2978_s28  ;;  %1665 = vrot.lane.b32.xlu1 %v3270_v22, %s2976_s26 }
 0x189   : > { %1923 = vperm.xlu0 %2958, %v2898_v1   ;;  %1751 = vrot.lane.b32.xlu1 %v3270_v22, %s2977_s27 }
 0x18d   : > { %1837 = vrot.lane.b32.xlu1 %v3270_v22, %s2978_s28 }
 0x1df   : > { %v1242_v2 = vpop.permute.xlu0 %1241  ;;  %v1155_v23 = vpop.permute.xlu1 %1154 }
 0x1e3   : > { %v1328_v24 = vpop.permute.xlu0 %1327  ;;  %v1157_v25 = vpop.permute.xlu1 %1156 }
 0x1e4   : > { %v3307_v26 = vsel %vm209_vm2, %v1157_v25, %v1155_v23  ;;  %v3311_v28 = vsel %vm209_vm2, %v1155_v23, %v1157_v25 }
 0x1e5   : > { %1194 = vmatprep.subr.mxu1 %v3311_v28 }
 0x1e6   : > { %1195 = vmatpush1.msra.mxu1 %v3307_v26 }
 0x1e7   : > { %v1414_v30 = vpop.permute.xlu0 %1413  ;;  %v1244_v32 = vpop.permute.xlu1 %1243  ;;  %2881 = vmatmul.mubr.msk.f32.vlgmr.msra.gmra.mxu1 %vm1160_vm10, %v2880_v29 }
 0x1e8   : > { %v3321_v33 = vsel %vm316_vm0, %v1244_v32, %v1242_v2  ;;  %v3325_v34 = vsel %vm316_vm0, %v1242_v2, %v1244_v32  ;;  %1400 = vmatprep.mubr.f32.mxu1 %v2969_v0 }
 0x1e9   : > { %1280 = vmatprep.subr.mxu0 %v3325_v34 }
 0x1ea   : > { %1281 = vmatpush1.msra.mxu0 %v3321_v33 }
 0x1eb   : > { %v1330_v36 = vpop.permute.xlu1 %1329  ;;  %2883 = vmatmul.mubr.msk.f32.vlgmr.msra.gmra.mxu0 %vm1160_vm10, %v2882_v35  ;;  %v1578_v42 = vpop.permute.xlu0 %1577 }
 0x1ec   : > { %v3336_v37 = vsel %vm422_vm4, %v1330_v36, %v1328_v24  ;;  %v3340_v40 = vsel %vm422_vm4, %v1328_v24, %v1330_v36  ;;  %1486 = vmatprep.mubr.f32.mxu0 %v2969_v0 }
 0x1ed   : > { %1366 = vmatprep.subr.mxu1 %v3340_v40 }
 0x1ee   : > { %1367 = vmatpush1.msra.mxu1 %v3336_v37 }
 0x1ef   : > { %1532 = vmatprep.subr.mxu1 %v3270_v22  ;;  %v1416_v43 = vpop.permute.xlu1 %1415  ;;  %2885 = vmatmul.mubr.msk.f32.vlgmr.msra.gmra.mxu1 %vm1160_vm10, %v2884_v41  ;;  %v1664_v52 = vpop.permute.xlu0 %1663 }
 0x1f0   : > { %v3352_v44 = vsel %vm528_vm5, %v1416_v43, %v1414_v30  ;;  %1533 = vmatpush1.msra.mxu1 %v3260_v21  ;;  %v3357_v45 = vsel %vm528_vm5, %v1414_v30, %v1416_v43  ;;  %1566 = vmatprep.mubr.f32.mxu1 %v2969_v0 }
 0x1f1   : > { %1452 = vmatprep.subr.mxu0 %v3357_v45 }
 0x1f2   : > { %1453 = vmatpush1.msra.mxu0 %v3352_v44 }
 0x1f3   : > { %v1580_v54 = vpop.permute.xlu1 %1579  ;;  %2887 = vmatmul.mubr.msk.f32.vlgmr.msra.gmra.mxu0 %vm1160_vm10, %v2886_v47  ;;  %2889 = vmatmul.mubr.msk.f32.vlgmr.msra.gmra.mxu1 %vm1160_vm10, %v2888_v50  ;;  %v1750_v49 = vpop.permute.xlu0 %1749 }
 0x1f4   : > { %v3372_v57 = vsel %vm716_vm6, %v1578_v42, %v1580_v54  ;;  %v3376_v58 = vsel %vm716_vm6, %v1580_v54, %v1578_v42  ;;  %1650 = vmatprep.mubr.f32.mxu0 %v2969_v0  ;;  %1736 = vmatprep.mubr.f32.mxu1 %v2969_v0 }
 0x1f5   : > { %1616 = vmatprep.subr.mxu0 %v3376_v58 }
 0x1f6   : > { %1617 = vmatpush1.msra.mxu0 %v3372_v57 }
 0x1f7   : > { %v1666_v62 = vpop.permute.xlu1 %1665  ;;  %2891 = vmatmul.mubr.msk.f32.vlgmr.msra.gmra.mxu0 %vm1160_vm10, %v2890_v59  ;;  %v1836_v14 = vpop.permute.xlu0 %1835 }
 0x1f8   : > { %v3388_v63 = vsel %vm822_vm7, %v1664_v52, %v1666_v62  ;;  %v3392_v3 = vsel %vm822_vm7, %v1666_v62, %v1664_v52  ;;  %1822 = vmatprep.mubr.f32.mxu0 %v2969_v0 }
 0x1f9   : > { %1702 = vmatprep.subr.mxu1 %v3392_v3 }
 0x1fa   : > { %1703 = vmatpush1.msra.mxu1 %v3388_v63 }
 0x1fb   : > { %v1752_v8 = vpop.permute.xlu1 %1751  ;;  %2893 = vmatmul.mubr.msk.f32.vlgmr.msra.gmra.mxu1 %vm1160_vm10, %v2892_v7 }
 0x1fc   : > { %v3403_v9 = vsel %vm928_vm8, %v1750_v49, %v1752_v8  ;;  %v3407_v10 = vsel %vm928_vm8, %v1752_v8, %v1750_v49  ;;  %1908 = vmatprep.mubr.f32.mxu1 %v2969_v0 }
 0x1fd   : > { %1788 = vmatprep.subr.mxu0 %v3407_v10 }
 0x1fe   : > { %1789 = vmatpush1.msra.mxu0 %v3403_v9 }
 0x1ff   : > { %2895 = vmatmul.mubr.msk.f32.vlgmr.msra.gmra.mxu0 %vm1160_vm10, %v2894_v13  ;;  %v1838_v15 = vpop.permute.xlu1 %1837 }
 0x200   : > { %v3418_v16 = vsel %vm1034_vm9, %v1836_v14, %v1838_v15  ;;  %v3422_v17 = vsel %vm1034_vm9, %v1838_v15, %v1836_v14  ;;  %2012 = vmatprep.mubr.f32.mxu0 %v2969_v0 }
 0x201   : > { %1874 = vmatprep.subr.mxu1 %v3422_v17 }
 0x202   : > { %1875 = vmatpush1.msra.mxu1 %v3418_v16 }
 0x203   : > { %2897 = vmatmul.mubr.msk.f32.vlgmr.msra.gmra.mxu1 %vm1160_vm10, %v2896_v19 }
 0x204   : > { %2104 = vmatprep.mubr.f32.mxu1 %v2969_v0 }
 0x2a7   : > { %v1230_v20 = vpop.f32.mrf.mxu1 }
 0x2a8   : > { %v1235_v51 = vmul.f32 %v1230_v20, %v3180_v55 }
 0x2a9   : > { %v1232_v1 = vpop.f32.mrf.mxu1 }
 0x2aa   : > { %v1236_v23 = vmul.f32 %v1232_v1, %v3192_v60 }
 0x2ab   : > { %v1316_v2 = vpop.f32.mrf.mxu0 }
 0x2ac   : > { %v1321_v24 = vmul.f32 %v1316_v2, %v3178_v53 }
 0x2ad   : > { %v1318_v25 = vpop.f32.mrf.mxu0 }
 0x2ae   : > { %v1323_v29 = vadd.f32 %v1321_v24, %v1235_v51  ;;  %v1322_v30 = vmul.f32 %v1318_v25, %v3183_v56 }
 0x2af   : > { %v1402_v32 = vpop.f32.mrf.mxu1 }
 0x2b0   : > { %v1324_v35 = vadd.f32 %v1322_v30, %v1236_v23  ;;  %v1407_v36 = vmul.f32 %v1402_v32, %v3197_v4 }
 0x2b1   : > { %v1404_v41 = vpop.f32.mrf.mxu1 }
 0x2b2   : > { %v1409_v42 = vadd.f32 %v1407_v36, %v1323_v29  ;;  %v1408_v43 = vmul.f32 %v1404_v41, %v3206_v11 }
 0x2b3   : > { %v1488_v47 = vpop.f32.mrf.mxu0  ;;  %v1568_v50 = vpop.f32.mrf.mxu1 }
 0x2b4   : > { %v1410_v52 = vadd.f32 %v1408_v43, %v1324_v35  ;;  %v1493_v54 = vmul.f32 %v1488_v47, %v3199_v5 }
 0x2b5   : > { %v1490_v59 = vpop.f32.mrf.mxu0  ;;  %v1570_v49 = vpop.f32.mrf.mxu1 }
 0x2b6   : > { %v1494_v62 = vmul.f32 %v1490_v59, %v3209_v12  ;;  %v1495_v7 = vadd.f32 %v1493_v54, %v1409_v42 }
 0x2b7   : > { %v1652_v8 = vpop.f32.mrf.mxu0 }
 0x2b8   : > { %v1573_v13 = vadd.f32 %v1568_v50, %v1495_v7  ;;  %v1496_v14 = vadd.f32 %v1494_v62, %v1410_v52  ;;  %v1657_v15 = vmul.f32 %v1652_v8, %v3213_v18  ;;  %v1924_v7 = vpop.permute.xlu0 %1923 }
 0x2b9   : > { %v1654_v19 = vpop.f32.mrf.mxu0 }
 0x2ba   : > { %v1574_v51 = vadd.f32 %v1570_v49, %v1496_v14  ;;  %v1659_v1 = vadd.f32 %v1657_v15, %v1573_v13  ;;  %v1658_v2 = vmul.f32 %v1654_v19, %v3221_v27  ;;  %v2935_v19 = vld [vmem:[%s3627_s2 + $0x8] sm:$0xf] }
 0x2bb   : > { %v1738_v20 = vpop.f32.mrf.mxu1 }
 0x2bc   : > { %v1743_v23 = vmul.f32 %v1738_v20, %v3224_v31  ;;  %v1660_v29 = vadd.f32 %v1658_v2, %v1574_v51 }
 0x2bd   : > { %v1740_v24 = vpop.f32.mrf.mxu1 }
 0x2be   : > { %v1745_v30 = vadd.f32 %v1743_v23, %v1659_v1  ;;  %v1744_v32 = vmul.f32 %v1740_v24, %v3230_v38  ;;  %v2899_v24 = vld [vmem:[%s3626_s1 + $0x48] sm:$0xf] }
 0x2bf   : > { %v1824_v25 = vpop.f32.mrf.mxu0 }
 0x2c0   : > { %v1829_v35 = vmul.f32 %v1824_v25, %v3232_v39  ;;  %v1746_v43 = vadd.f32 %v1744_v32, %v1660_v29 }
 0x2c1   : > { %v1826_v36 = vpop.f32.mrf.mxu0 }
 0x2c2   : > { %v1830_v41 = vmul.f32 %v1826_v36, %v3240_v46  ;;  %v1831_v47 = vadd.f32 %v1829_v35, %v1745_v30 }
 0x2c3   : > { %v1910_v42 = vpop.f32.mrf.mxu1 }
 0x2c4   : > { %v1915_v50 = vmul.f32 %v1910_v42, %v3242_v48  ;;  %v1832_v54 = vadd.f32 %v1830_v41, %v1746_v43  ;;  %v2907_v42 = vld [vmem:[%s3626_s1 + $0x50] sm:$0xf] }
 0x2c5   : > { %v1912_v52 = vpop.f32.mrf.mxu1 }
 0x2c6   : > { %v1917_v59 = vadd.f32 %v1915_v50, %v1831_v47  ;;  %v1916_v62 = vmul.f32 %v1912_v52, %v3248_v61 }
 0x2c8   : > { %v1926_v49 = vadd.f32 %v1924_v7, %v1917_v59  ;;  %v1918_v8 = vadd.f32 %v1916_v62, %v1832_v54  ;;  %v2915_v54 = vld [vmem:[%s3626_s1 + $0x58] sm:$0xf] }
 0x2ca   : > { %v3448_v13 = vmax.f32 %v1926_v49, 0.0  ;;  %v1927_v14 = vadd.f32 %v1924_v7, %v1918_v8 }
 0x2cc   : > { %v3450_v15 = vmax.f32 %v1927_v14, 0.0  ;;  %1932 = vrot.lane.b32.xlu1 %v3448_v13, %s2971_s22 }
 0x2ce   : > { %1934 = vrot.lane.b32.xlu0 %v3450_v15, %s2971_s22 }
 0x2d0   : > { %2025 = vrot.lane.b32.xlu1 %v3448_v13, %s2970_s21 }
 0x2d2   : > { %2027 = vrot.lane.b32.xlu0 %v3450_v15, %s2970_s21 }
 0x2d4   : > { %2117 = vrot.lane.b32.xlu1 %v3448_v13, %s2972_s23 }
 0x2d6   : > { %2119 = vrot.lane.b32.xlu0 %v3450_v15, %s2972_s23 }
 0x2d8   : > { %2209 = vrot.lane.b32.xlu1 %v3448_v13, %s2973_s24 }
 0x2da   : > { %2211 = vrot.lane.b32.xlu0 %v3450_v15, %s2973_s24 }
 0x2dc   : > { %2385 = vrot.lane.b32.xlu1 %v3448_v13, %s2974_s25 }
 0x2de   : > { %2387 = vrot.lane.b32.xlu0 %v3450_v15, %s2974_s25 }
 0x2e0   : > { %2477 = vrot.lane.b32.xlu1 %v3448_v13, %s2976_s26 }
 0x2e2   : > { %2479 = vrot.lane.b32.xlu0 %v3450_v15, %s2976_s26 }
 0x2e4   : > { %2569 = vrot.lane.b32.xlu1 %v3448_v13, %s2977_s27 }
 0x2e6   : > { %2571 = vrot.lane.b32.xlu0 %v3450_v15, %s2977_s27 }
 0x2e8   : > { %2661 = vrot.lane.b32.xlu1 %v3448_v13, %s2978_s28 }
 0x2ea   : > { %2663 = vrot.lane.b32.xlu0 %v3450_v15, %s2978_s28 }
 0x2ec   : > { %2755 = vperm.xlu1 %2959, %v2935_v19  }
 0x33e   : > { %v1933_v20 = vpop.permute.xlu1 %1932 }
 0x340   : > { %v1935_v51 = vpop.permute.xlu0 %1934 }
 0x341   : > { %v1936_v1 = vsel %vm209_vm2, %v1933_v20, %v1935_v51  ;;  %v1937_v2 = vsel %vm209_vm2, %v1935_v51, %v1933_v20 }
 0x342   : > { %v2026_v23 = vpop.permute.xlu1 %2025  ;;  %2900 = vmatprep.subr.msk.mxu0 %vm216_vm1, %v1936_v1 }
 0x343   : > { %2901 = vmatpush1.msk.msra.mxu0 %vm216_vm1, %v1937_v2 }
 0x344   : > { %1978 = vmatprep.subr.mxu0 %v3311_v28  ;;  %v2028_v25 = vpop.permute.xlu0 %2027  ;;  %v2903_v28 = vld [vmem:[%s3626_s1 + $0x4c] sm:$0xf] }
 0x345   : > { %v2029_v29 = vsel %vm316_vm0, %v2026_v23, %v2028_v25  ;;  %v2030_v30 = vsel %vm316_vm0, %v2028_v25, %v2026_v23  ;;  %1979 = vmatpush1.msra.mxu0 %v3307_v26 }
 0x346   : > { %v2118_v32 = vpop.permute.xlu1 %2117  ;;  %2904 = vmatprep.subr.msk.mxu1 %vm216_vm1, %v2029_v29  ;;  %2902 = vmatmul.mubr.msk.f32.vlgmr.msra.gmra.mxu0 %vm1938_vm11, %v2899_v24 }
 0x347   : > { %2905 = vmatpush1.msk.msra.mxu1 %vm216_vm1, %v2030_v30  ;;  %2196 = vmatprep.mubr.f32.mxu0 %v2969_v0 }
 0x348   : > { %2070 = vmatprep.subr.mxu1 %v3325_v34  ;;  %v2120_v35 = vpop.permute.xlu0 %2119 }
 0x349   : > { %v2121_v36 = vsel %vm422_vm4, %v2118_v32, %v2120_v35  ;;  %v2122_v26 = vsel %vm422_vm4, %v2120_v35, %v2118_v32  ;;  %2071 = vmatpush1.msra.mxu1 %v3321_v33 }
 0x34a   : > { %v2210_v41 = vpop.permute.xlu1 %2209  ;;  %2908 = vmatprep.subr.msk.mxu0 %vm216_vm1, %v2121_v36  ;;  %2906 = vmatmul.mubr.msk.f32.vlgmr.msra.gmra.mxu1 %vm1938_vm11, %v2903_v28 }
 0x34b   : > { %2909 = vmatpush1.msk.msra.mxu0 %vm216_vm1, %v2122_v26  ;;  %2288 = vmatprep.mubr.f32.mxu1 %v2969_v0 }
 0x34c   : > { %2162 = vmatprep.subr.mxu0 %v3340_v40  ;;  %v2212_v34 = vpop.permute.xlu0 %2211 }
 0x34d   : > { %v2213_v43 = vsel %vm528_vm5, %v2210_v41, %v2212_v34  ;;  %v2214_v33 = vsel %vm528_vm5, %v2212_v34, %v2210_v41  ;;  %2163 = vmatpush1.msra.mxu0 %v3336_v37  ;;  %v2911_v37 = vld [vmem:[%s3626_s1 + $0x54] sm:$0xf] }
 0x34e   : > { %v2386_v47 = vpop.permute.xlu1 %2385  ;;  %2912 = vmatprep.subr.msk.mxu1 %vm216_vm1, %v2213_v43  ;;  %2916 = vmatprep.subr.msk.mxu0 %vm216_vm1, %v3450_v15 }
 0x34f   : > { %2910 = vmatmul.mubr.msk.f32.vlgmr.msra.gmra.mxu0 %vm1938_vm11, %v2907_v42  ;;  %2913 = vmatpush1.msk.msra.mxu1 %vm216_vm1, %v2214_v33 }
 0x350   : > { %2917 = vmatpush1.msk.msra.mxu0 %vm216_vm1, %v3448_v13  ;;  %2254 = vmatprep.subr.mxu1 %v3357_v45  ;;  %v2388_v40 = vpop.permute.xlu0 %2387 }
 0x351   : > { %2340 = vmatprep.subr.mxu0 %v3270_v22  ;;  %v2389_v50 = vsel %vm716_vm6, %v2386_v47, %v2388_v40  ;;  %v2390_v52 = vsel %vm716_vm6, %v2388_v40, %v2386_v47  ;;  %2255 = vmatpush1.msra.mxu1 %v3352_v44  ;;  %v2919_v44 = vld [vmem:[%s3626_s1 + $0x5c] sm:$0xf] }
 0x352   : > { %2341 = vmatpush1.msra.mxu0 %v3260_v21  ;;  %v2478_v45 = vpop.permute.xlu1 %2477  ;;  %2920 = vmatprep.subr.msk.mxu1 %vm216_vm1, %v2390_v52 }
 0x353   : > { %2914 = vmatmul.mubr.msk.f32.vlgmr.msra.gmra.mxu1 %vm1938_vm11, %v2911_v37  ;;  %2374 = vmatprep.mubr.f32.mxu0 %v2969_v0 }
 0x354   : > { %2921 = vmatpush1.msk.msra.mxu1 %vm216_vm1, %v2389_v50  ;;  %v2480_v22 = vpop.permute.xlu0 %2479  ;;  %2918 = vmatmul.mubr.msk.f32.vlgmr.msra.gmra.mxu0 %vm1938_vm11, %v2915_v54 }
 0x355   : > { %2430 = vmatprep.subr.mxu1 %v3376_v58  ;;  %v2481_v21 = vsel %vm822_vm7, %v2478_v45, %v2480_v22  ;;  %v2482_v59 = vsel %vm822_vm7, %v2480_v22, %v2478_v45  ;;  %2464 = vmatprep.mubr.f32.mxu1 %v2969_v0  ;;  %v2923_v58 = vld [vmem:[%s3626_s1 + $0x60] sm:$0xf] }
 0x356   : > { %2431 = vmatpush1.msra.mxu1 %v3372_v57  ;;  %v2570_v62 = vpop.permute.xlu1 %2569  ;;  %2924 = vmatprep.subr.msk.mxu0 %vm216_vm1, %v2482_v59 }
 0x357   : > { %2925 = vmatpush1.msk.msra.mxu0 %vm216_vm1, %v2481_v21  ;;  %2922 = vmatmul.mubr.msk.f32.vlgmr.msra.gmra.mxu1 %vm1938_vm11, %v2919_v44 }
 0x358   : > { %2522 = vmatprep.subr.mxu0 %v3392_v3  ;;  %v2572_v7 = vpop.permute.xlu0 %2571  ;;  %2556 = vmatprep.mubr.f32.mxu0 %v2969_v0  ;;  %v2927_v3 = vld [vmem:[%s3626_s1 + $0x64] sm:$0xf] }
 0x359   : > { %v2573_v49 = vsel %vm928_vm8, %v2570_v62, %v2572_v7  ;;  %v2574_v57 = vsel %vm928_vm8, %v2572_v7, %v2570_v62  ;;  %2523 = vmatpush1.msra.mxu0 %v3388_v63  ;;  %2648 = vmatprep.mubr.f32.mxu1 %v2969_v0 }
 0x35a   : > { %2928 = vmatprep.subr.msk.mxu1 %vm216_vm1, %v2574_v57  ;;  %2926 = vmatmul.mubr.msk.f32.vlgmr.msra.gmra.mxu0 %vm1938_vm11, %v2923_v58  ;;  %v2662_v8 = vpop.permute.xlu1 %2661 }
 0x35b   : > { %2929 = vmatpush1.msk.msra.mxu1 %vm216_vm1, %v2573_v49  ;;  %2740 = vmatprep.mubr.f32.mxu0 %v2969_v0  ;;  %v2931_v0 = vld [vmem:[%s3626_s1 + $0x68] sm:$0xf] }
 0x35c   : > { %2614 = vmatprep.subr.mxu1 %v3407_v10  ;;  %v2664_v14 = vpop.permute.xlu0 %2663 }
 0x35d   : > { %v2665_v63 = vsel %vm1034_vm9, %v2662_v8, %v2664_v14  ;;  %v2666_v19 = vsel %vm1034_vm9, %v2664_v14, %v2662_v8  ;;  %2615 = vmatpush1.msra.mxu1 %v3403_v9 }
 0x35e   : > { %2932 = vmatprep.subr.msk.mxu0 %vm216_vm1, %v2666_v19  ;;  %2930 = vmatmul.mubr.msk.f32.vlgmr.msra.gmra.mxu1 %vm1938_vm11, %v2927_v3 }
 0x35f   : > { %2933 = vmatpush1.msk.msra.mxu0 %vm216_vm1, %v2665_v63 }
 0x360   : > { %2706 = vmatprep.subr.mxu0 %v3422_v17 }
 0x361   : > { %2707 = vmatpush1.msra.mxu0 %v3418_v16 }
 0x362   : > { %2934 = vmatmul.mubr.msk.f32.vlgmr.msra.gmra.mxu0 %vm1938_vm11, %v2931_v0 }
 0x406   : > { %v2014_v6 = vpop.f32.mrf.mxu0 }
 0x407   : > { %v2019_v10 = vmul.f32 %v2014_v6, %v3180_v55 }
 0x408   : > { %v2016_v20 = vpop.f32.mrf.mxu0 }
 0x409   : > { %v2020_v1 = vmul.f32 %v2016_v20, %v3192_v60 }
 0x40a   : > { %v2106_v9 = vpop.f32.mrf.mxu1 }
 0x40b   : > { %v2111_v51 = vmul.f32 %v2106_v9, %v3178_v53 }
 0x40c   : > { %v2108_v2 = vpop.f32.mrf.mxu1 }
 0x40d   : > { %v2112_v23 = vmul.f32 %v2108_v2, %v3183_v56  ;;  %v2113_v24 = vadd.f32 %v2111_v51, %v2019_v10 }
 0x40f   : > { %v2198_v25 = vpop.f32.mrf.mxu0  ;;  %v2114_v29 = vadd.f32 %v2112_v23, %v2020_v1 }
 0x410   : > { %v2203_v17 = vmul.f32 %v2198_v25, %v3197_v4 }
 0x411   : > { %v2200_v16 = vpop.f32.mrf.mxu0 }
 0x412   : > { %v2205_v30 = vadd.f32 %v2203_v17, %v2113_v24  ;;  %v2204_v32 = vmul.f32 %v2200_v16, %v3206_v11 }
 0x413   : > { %v2290_v28 = vpop.f32.mrf.mxu1 }
 0x414   : > { %v2206_v55 = vadd.f32 %v2204_v32, %v2114_v29  ;;  %v2295_v35 = vmul.f32 %v2290_v28, %v3199_v5  ;;  %v2376_v36 = vpop.f32.mrf.mxu0 }
 0x415   : > { %v2292_v53 = vpop.f32.mrf.mxu1 }
 0x416   : > { %v2296_v60 = vmul.f32 %v2292_v53, %v3209_v12  ;;  %v2297_v26 = vadd.f32 %v2295_v35, %v2205_v30  ;;  %v2378_v41 = vpop.f32.mrf.mxu0 }
 0x417   : > { %v2466_v56 = vpop.f32.mrf.mxu1 }
 0x418   : > { %v2381_v34 = vadd.f32 %v2376_v36, %v2297_v26  ;;  %v2298_v42 = vadd.f32 %v2296_v60, %v2206_v55  ;;  %v2471_v43 = vmul.f32 %v2466_v56, %v3213_v18 }
 0x419   : > { %v2468_v4 = vpop.f32.mrf.mxu1 }
 0x41a   : > { %v2558_v33 = vpop.f32.mrf.mxu0  ;;  %v2382_v47 = vadd.f32 %v2378_v41, %v2298_v42  ;;  %v2473_v40 = vadd.f32 %v2471_v43, %v2381_v34  ;;  %v2472_v11 = vmul.f32 %v2468_v4, %v3221_v27 }
 0x41b   : > { %v2563_v37 = vmul.f32 %v2558_v33, %v3224_v31  ;;  %v2756_v31 = vpop.permute.xlu1 %2755 }
 0x41c   : > { %v2560_v5 = vpop.f32.mrf.mxu0  ;;  %v2474_v52 = vadd.f32 %v2472_v11, %v2382_v47 }
 0x41d   : > { %v2565_v54 = vadd.f32 %v2563_v37, %v2473_v40  ;;  %v2564_v12 = vmul.f32 %v2560_v5, %v3230_v38 }
 0x41e   : > { %v2650_v50 = vpop.f32.mrf.mxu1 }
 0x41f   : > { %v2655_v45 = vmul.f32 %v2650_v50, %v3232_v39  ;;  %v2566_v21 = vadd.f32 %v2564_v12, %v2474_v52 }
 0x420   : > { %v2652_v22 = vpop.f32.mrf.mxu1 }
 0x421   : > { %v2656_v44 = vmul.f32 %v2652_v22, %v3240_v46  ;;  %v2657_v59 = vadd.f32 %v2655_v45, %v2565_v54 }
 0x422   : > { %v2742_v18 = vpop.f32.mrf.mxu0 }
 0x423   : > { %v2747_v62 = vmul.f32 %v2742_v18, %v3242_v48  ;;  %v2658_v58 = vadd.f32 %v2656_v44, %v2566_v21 }
 0x424   : > { %v2744_v27 = vpop.f32.mrf.mxu0 }
 0x425   : > { %v2748_v7 = vmul.f32 %v2744_v27, %v3248_v61  ;;  %v2749_v49 = vadd.f32 %v2747_v62, %v2657_v59 }
 0x427   : > { %v2750_v57 = vadd.f32 %v2748_v7, %v2658_v58  ;;  %v2758_v38 = vadd.f32 %v2756_v31, %v2749_v49 }
 0x429   : > { %v2759_v3 = vadd.f32 %v2756_v31, %v2750_v57  ;;  %v2760_v39 = vmax.f32 %v2758_v38, 0.0 }
 0x42b   : > { %v2761_v8 = vmax.f32 %v2759_v3, 0.0  ;;  %v2764_v14 = vrot.slane %v2760_v39, 4 }
 0x42d   : > { %v2765_v46 = vrot.slane %v2761_v8, 4  ;;  %v2768_v63 = vsel %vm216_vm1, %v3448_v13, %v2764_v14 }
 0x42e   : > { %2772 = vst [vmem:[%s3256_s10 + $0x10] sm:$0xff] %v2768_v63 }
 0x42f   : > { %v2769_v48 = vsel %vm216_vm1, %v3450_v15, %v2765_v46 }
 0x430   : > { %2773 = vst [vmem:[%s3256_s10 + $0x18] sm:$0xff] %v2769_v48 }
 0x431 PF: > { %s14_s15 = sadd.s32 1, %s2967_s15  }
 0x432   : > { %p11_p4 = scmp.ge.s32.totalorder %s14_s15, 4  }
 0x434   :  { %13 = sbr.rel (!%p11_p4) target bundleno = 1 (0x1), region = 101 }

</bundles_post_ra>
